<compile_context>
chip_gen: v7x
topology: tpu7x:2x2x1
jax: 0.10.0
libtpu: 0.0.40
codegen_flags: <defaults>
</compile_context>

<pallas_src>
import jax
import jax.numpy as jnp
from jax.experimental import pallas as pl
from jax.experimental.pallas import tpu as pltpu

IN_DIM = 28 * 28          # 784
K_PAD = 896               # 784 rounded up to a multiple of 128 lanes
HIDDEN = 512
OUT_DIM = 10
N_PAD = 128               # 10 rounded up to a full 128-lane vreg


def _round_up(n, m):
    return ((n + m - 1) // m) * m


def mlp_kernel(x_ref, w1_ref, b1_ref, w2_ref, b2_ref, w3_ref, b3_ref, o_ref):
    # Layer 1: (TB, 896) bf16 @ (896, 512) bf16 -> f32 acc, + bias, ReLU
    h1 = jnp.dot(x_ref[...], w1_ref[...], preferred_element_type=jnp.float32)
    h1 = jnp.maximum(h1 + b1_ref[...], 0.0).astype(jnp.bfloat16)
    # Layer 2: (TB, 512) @ (512, 512)
    h2 = jnp.dot(h1, w2_ref[...], preferred_element_type=jnp.float32)
    h2 = jnp.maximum(h2 + b2_ref[...], 0.0).astype(jnp.bfloat16)
    # Layer 3: (TB, 512) @ (512, 128)  -- N padded to a full lane group, so the
    # output store is an unmasked, lane-dense vst.
    logits = jnp.dot(h2, w3_ref[...], preferred_element_type=jnp.float32)
    o_ref[...] = (logits + b3_ref[...]).astype(o_ref.dtype)


def neural_network_forward(x, params, block_b=256):
    """x: (B, 1, 28, 28) float32  ->  logits (B, 10) float32."""
    w1, b1, w2, b2, w3, b3 = params
    B = x.shape[0]
    x_flat = x.reshape(B, -1).astype(jnp.float32)  # nn.Flatten (row-major, 784)

    # ---- lane-dense padding (K: 784 -> 896, N: 10 -> 128) ----
    x_p = jnp.pad(x_flat, ((0, 0), (0, K_PAD - IN_DIM)))
    w1_p = jnp.pad(w1, ((0, K_PAD - IN_DIM), (0, 0)))
    w3_p = jnp.pad(w3, ((0, 0), (0, N_PAD - OUT_DIM)))
    b3_p = jnp.pad(b3, ((0, 0), (0, N_PAD - OUT_DIM)))

    # ---- bf16 matmul operands, f32 biases / accumulation ----
    x_bf = x_p.astype(jnp.bfloat16)
    w1_bf = w1_p.astype(jnp.bfloat16)
    w2_bf = w2.astype(jnp.bfloat16)
    w3_bf = w3_p.astype(jnp.bfloat16)

    # ---- batch tiling ----
    tb = block_b if B >= block_b else _round_up(B, 8)
    b_pad = _round_up(B, tb)
    if b_pad != B:
        x_bf = jnp.pad(x_bf, ((0, b_pad - B), (0, 0)))
    grid = (b_pad // tb,)

    out = pl.pallas_call(
        mlp_kernel,
        out_shape=jax.ShapeDtypeStruct((b_pad, N_PAD), jnp.float32),
        grid_spec=pltpu.PrefetchScalarGridSpec(
            num_scalar_prefetch=0,
            grid=grid,
            in_specs=[
                pl.BlockSpec((tb, K_PAD), lambda i: (i, 0)),       # x tile
                pl.BlockSpec((K_PAD, HIDDEN), lambda i: (0, 0)),   # w1 (resident)
                pl.BlockSpec((1, HIDDEN), lambda i: (0, 0)),       # b1
                pl.BlockSpec((HIDDEN, HIDDEN), lambda i: (0, 0)),  # w2
                pl.BlockSpec((1, HIDDEN), lambda i: (0, 0)),       # b2
                pl.BlockSpec((HIDDEN, N_PAD), lambda i: (0, 0)),   # w3 (padded)
                pl.BlockSpec((1, N_PAD), lambda i: (0, 0)),        # b3 (padded)
            ],
            out_specs=pl.BlockSpec((tb, N_PAD), lambda i: (i, 0)),
        ),
        compiler_params=pltpu.CompilerParams(
            dimension_semantics=("parallel",),      # megacore-shard batch tiles
            vmem_limit_bytes=64 << 20,
        ),
    )(x_bf, w1_bf, b1, w2_bf, b2, w3_bf, b3_p)

    return out[:B, :OUT_DIM]


def init_params(key):
    """Deterministic synthetic parameters with the shapes implied by __init__.

    PyTorch nn.Linear(in, out) has weight (out, in) and bias (out,); we store
    the weight transposed as (in, out) and the bias as (1, out).
    """
    k1, k2, k3, k4, k5, k6 = jax.random.split(key, 6)

    def uinit(k, shape, fan_in):
        bound = 1.0 / jnp.sqrt(fan_in)
        return jax.random.uniform(k, shape, jnp.float32, -bound, bound)

    w1 = uinit(k1, (IN_DIM, HIDDEN), IN_DIM)
    b1 = uinit(k2, (1, HIDDEN), IN_DIM)
    w2 = uinit(k3, (HIDDEN, HIDDEN), HIDDEN)
    b2 = uinit(k4, (1, HIDDEN), HIDDEN)
    w3 = uinit(k5, (HIDDEN, OUT_DIM), HIDDEN)
    b3 = uinit(k6, (1, OUT_DIM), HIDDEN)
    return (w1, b1, w2, b2, w3, b3)


def reference_forward(x, params):
    """Pure-JAX f32 reference matching the PyTorch forward semantics."""
    w1, b1, w2, b2, w3, b3 = params
    h = x.reshape(x.shape[0], -1)
    h = jnp.maximum(h @ w1 + b1, 0.0)
    h = jnp.maximum(h @ w2 + b2, 0.0)
    return h @ w3 + b3


if __name__ == "__main__":
    key = jax.random.PRNGKey(0)
    kx, kp = jax.random.split(key)

    # Small batch, MNIST-like input shape (B, 1, 28, 28) as NCHW.
    x = jax.random.normal(kx, (8, 1, 28, 28), dtype=jnp.float32)
    params = init_params(kp)

    logits = neural_network_forward(x, params)
    logits = jax.block_until_ready(logits)

    ref = reference_forward(x, params)
    assert logits.shape == (8, 10)
    # bf16 matmul inputs (f32 accumulation) -> relaxed tolerance vs f32 reference.
    assert jnp.allclose(logits, ref, atol=3e-2, rtol=3e-2)

    print("KERNEL_OK")
</pallas_src>

<mosaic_0001>
module attributes {stable_mosaic.version = 11 : i64} {
  func.func @mlp_kernel(%arg0: i32, %arg1: memref<8x896xbf16, #tpu.memory_space<vmem>>, %arg2: memref<896x512xbf16, #tpu.memory_space<vmem>>, %arg3: memref<1x512xf32, #tpu.memory_space<vmem>>, %arg4: memref<512x512xbf16, #tpu.memory_space<vmem>>, %arg5: memref<1x512xf32, #tpu.memory_space<vmem>>, %arg6: memref<512x128xbf16, #tpu.memory_space<vmem>>, %arg7: memref<1x128xf32, #tpu.memory_space<vmem>>, %arg8: memref<8x128xf32, #tpu.memory_space<vmem>>) attributes {dimension_semantics = [#tpu.dimension_semantics<parallel>], iteration_bounds = array<i64: 1>, scalar_prefetch = 0 : i64, scratch_operands = 0 : i64, tpu.core_type = #tpu.core_type<tc>, window_params = [{transform_indices = @transform_0, window_bounds = array<i64: 8, 896>}, {pipeline_mode = #tpu.pipeline_mode<synchronous>, transform_indices = @transform_1, window_bounds = array<i64: 896, 512>}, {pipeline_mode = #tpu.pipeline_mode<synchronous>, transform_indices = @transform_2, window_bounds = array<i64: 1, 512>}, {pipeline_mode = #tpu.pipeline_mode<synchronous>, transform_indices = @transform_3, window_bounds = array<i64: 512, 512>}, {pipeline_mode = #tpu.pipeline_mode<synchronous>, transform_indices = @transform_4, window_bounds = array<i64: 1, 512>}, {pipeline_mode = #tpu.pipeline_mode<synchronous>, transform_indices = @transform_5, window_bounds = array<i64: 512, 128>}, {pipeline_mode = #tpu.pipeline_mode<synchronous>, transform_indices = @transform_6, window_bounds = array<i64: 1, 128>}, {transform_indices = @transform_7, window_bounds = array<i64: 8, 128>}]} {
    %c0 = arith.constant 0 : index
    %c0_0 = arith.constant 0 : index
    %0 = vector.load %arg1[%c0, %c0_0] : memref<8x896xbf16, #tpu.memory_space<vmem>>, vector<8x896xbf16>
    %c0_1 = arith.constant 0 : index
    %c0_2 = arith.constant 0 : index
    %1 = vector.load %arg2[%c0_1, %c0_2] : memref<896x512xbf16, #tpu.memory_space<vmem>>, vector<896x512xbf16>
    %cst = arith.constant dense<0.000000e+00> : vector<8x512xf32>
    %2 = tpu.matmul %0, %1, %cst {dimension_numbers = #tpu.dot_dimension_numbers<[1], [0], [0], [1], [0, 0, 1, 1], [], []>} : vector<8x896xbf16>, vector<896x512xbf16>, vector<8x512xf32> -> vector<8x512xf32>
    %c0_3 = arith.constant 0 : index
    %c0_4 = arith.constant 0 : index
    %3 = vector.load %arg3[%c0_3, %c0_4] : memref<1x512xf32, #tpu.memory_space<vmem>>, vector<1x512xf32>
    %4 = vector.broadcast %3 : vector<1x512xf32> to vector<8x512xf32>
    %5 = arith.addf %2, %4 : vector<8x512xf32>
    %cst_5 = arith.constant 0.000000e+00 : f32
    %6 = vector.broadcast %cst_5 : f32 to vector<8x512xf32>
    %7 = arith.maximumf %5, %6 : vector<8x512xf32>
    %8 = arith.truncf %7 : vector<8x512xf32> to vector<8x512xbf16>
    %c0_6 = arith.constant 0 : index
    %c0_7 = arith.constant 0 : index
    %9 = vector.load %arg4[%c0_6, %c0_7] : memref<512x512xbf16, #tpu.memory_space<vmem>>, vector<512x512xbf16>
    %cst_8 = arith.constant dense<0.000000e+00> : vector<8x512xf32>
    %10 = tpu.matmul %8, %9, %cst_8 {dimension_numbers = #tpu.dot_dimension_numbers<[1], [0], [0], [1], [0, 0, 1, 1], [], []>} : vector<8x512xbf16>, vector<512x512xbf16>, vector<8x512xf32> -> vector<8x512xf32>
    %c0_9 = arith.constant 0 : index
    %c0_10 = arith.constant 0 : index
    %11 = vector.load %arg5[%c0_9, %c0_10] : memref<1x512xf32, #tpu.memory_space<vmem>>, vector<1x512xf32>
    %12 = vector.broadcast %11 : vector<1x512xf32> to vector<8x512xf32>
    %13 = arith.addf %10, %12 : vector<8x512xf32>
    %cst_11 = arith.constant 0.000000e+00 : f32
    %14 = vector.broadcast %cst_11 : f32 to vector<8x512xf32>
    %15 = arith.maximumf %13, %14 : vector<8x512xf32>
    %16 = arith.truncf %15 : vector<8x512xf32> to vector<8x512xbf16>
    %c0_12 = arith.constant 0 : index
    %c0_13 = arith.constant 0 : index
    %17 = vector.load %arg6[%c0_12, %c0_13] : memref<512x128xbf16, #tpu.memory_space<vmem>>, vector<512x128xbf16>
    %cst_14 = arith.constant dense<0.000000e+00> : vector<8x128xf32>
    %18 = tpu.matmul %16, %17, %cst_14 {dimension_numbers = #tpu.dot_dimension_numbers<[1], [0], [0], [1], [0, 0, 1, 1], [], []>} : vector<8x512xbf16>, vector<512x128xbf16>, vector<8x128xf32> -> vector<8x128xf32>
    %c0_15 = arith.constant 0 : index
    %c0_16 = arith.constant 0 : index
    %19 = vector.load %arg7[%c0_15, %c0_16] : memref<1x128xf32, #tpu.memory_space<vmem>>, vector<1x128xf32>
    %20 = vector.broadcast %19 : vector<1x128xf32> to vector<8x128xf32>
    %21 = arith.addf %18, %20 : vector<8x128xf32>
    %c0_17 = arith.constant 0 : index
    %c0_18 = arith.constant 0 : index
    %22 = vector.load %arg8[%c0_17, %c0_18] : memref<8x128xf32, #tpu.memory_space<vmem>>, vector<8x128xf32>
    tpu.vector_store %arg8[%c0_17, %c0_18], %21 {strides = array<i32>} : memref<8x128xf32, #tpu.memory_space<vmem>>, vector<8x128xf32>,
    return
  }
  func.func @transform_0(%arg0: i32) -> (i32, i32) {
    %c0_i32 = arith.constant 0 : i32
    %c0_i32_0 = arith.constant 0 : i32
    return %arg0, %c0_i32 : i32, i32
  }
  func.func @transform_1(%arg0: i32) -> (i32, i32) {
    %c0_i32 = arith.constant 0 : i32
    %c0_i32_0 = arith.constant 0 : i32
    %c0_i32_1 = arith.constant 0 : i32
    return %c0_i32, %c0_i32_0 : i32, i32
  }
  func.func @transform_2(%arg0: i32) -> (i32, i32) {
    %c0_i32 = arith.constant 0 : i32
    %c0_i32_0 = arith.constant 0 : i32
    %c0_i32_1 = arith.constant 0 : i32
    return %c0_i32, %c0_i32_0 : i32, i32
  }
  func.func @transform_3(%arg0: i32) -> (i32, i32) {
    %c0_i32 = arith.constant 0 : i32
    %c0_i32_0 = arith.constant 0 : i32
    %c0_i32_1 = arith.constant 0 : i32
    return %c0_i32, %c0_i32_0 : i32, i32
  }
  func.func @transform_4(%arg0: i32) -> (i32, i32) {
    %c0_i32 = arith.constant 0 : i32
    %c0_i32_0 = arith.constant 0 : i32
    %c0_i32_1 = arith.constant 0 : i32
    return %c0_i32, %c0_i32_0 : i32, i32
  }
  func.func @transform_5(%arg0: i32) -> (i32, i32) {
    %c0_i32 = arith.constant 0 : i32
    %c0_i32_0 = arith.constant 0 : i32
    %c0_i32_1 = arith.constant 0 : i32
    return %c0_i32, %c0_i32_0 : i32, i32
  }
  func.func @transform_6(%arg0: i32) -> (i32, i32) {
    %c0_i32 = arith.constant 0 : i32
    %c0_i32_0 = arith.constant 0 : i32
    %c0_i32_1 = arith.constant 0 : i32
    return %c0_i32, %c0_i32_0 : i32, i32
  }
  func.func @transform_7(%arg0: i32) -> (i32, i32) {
    %c0_i32 = arith.constant 0 : i32
    %c0_i32_0 = arith.constant 0 : i32
    return %arg0, %c0_i32 : i32, i32
  }
}

</mosaic_0001>

<bundles_post_ra>
// kernel: tpu_custom_call.1
= control target key start
LH: loop header
LB: loop body
LE: loop exit
PB: predicated region body
PF: predicated region fallthrough
CT: control target
= control target key end

     0   :  { %12 = vsyncpa [#allocation3], 0  ;;  %s4604_s0 = inlined_call_operand.hbm [shape: bf16[8,896], index: 0, kind: input, shape index: {}]   ;;  %s4605_s1 = inlined_call_operand.hbm [shape: bf16[896,512], index: 1, kind: input, shape index: {}]   ;;  %s4606_s2 = inlined_call_operand.hbm [shape: f32[1,512], index: 2, kind: input, shape index: {}]   ;;  %s4607_s3 = inlined_call_operand.hbm [shape: bf16[512,512], index: 3, kind: input, shape index: {}]   ;;  %s4608_s4 = inlined_call_operand.hbm [shape: f32[1,512], index: 4, kind: input, shape index: {}]   ;;  %s4609_s5 = inlined_call_operand.hbm [shape: bf16[512,128], index: 5, kind: input, shape index: {}]   ;;  %s4610_s6 = inlined_call_operand.hbm [shape: f32[1,128], index: 6, kind: input, shape index: {}]   ;;  %s4611_s7 = inlined_call_operand.hbm [shape: f32[8,128], index: 7, kind: output, shape index: {}]  }
   0x1   :  { %13 = vsyncpa [#allocation6], 0 }
   0x2   :  { %14 = vsyncpa [#allocation9], 0 }
   0x3   :  { %15 = vsyncpa [#allocation12], 0 }
   0x4   :  { %16 = vsyncpa [#allocation4], 0  ;;  %s4412_s24 = smov [#allocation5]   ;;  %s4226_s28 = scalar_lea.hbm %s4605_s1, 28672 }
   0x5   :  { %s32_s25 = sshll.u32 %s4412_s24, 4  ;;  %p4227_p0 = scmp.ne.s32.totalorder %s4605_s1, %s4226_s28  ;;  %s33_s25 = int_to_ptr.vmem [resolvable:$true] %s32_s25 }
   0x6   :  { %p4230_p1 = scmp.lt.u32.totalorder %s4226_s28, %s4605_s1 }
   0x8   :  { %p4232_p2 = pnand %p4230_p1, %p4227_p0 }
   0xa   :  { %4235 = shalt.err (!%p4232_p2)
}
   0xb   :  { %s4236_s10 = scalar_lea.vmem %s33_s25, 28672  ;;  %p4241_p4 = scmp.lt.s32.totalorder %s33_s25, %s33_s25 }
   0xc   :  { %p4237_p3 = scmp.ne.s32.totalorder %s33_s25, %s4236_s10  ;;  %p4242_p5 = scmp.lt.s32.totalorder %s4236_s10, %s4236_s10 }
   0xe   :  { %p4243_p6 = por %p4242_p5, %p4241_p4 }
  0x10   :  { %p4244_p7 = pnand %p4243_p6, %p4237_p3 }
  0x12   :  { %4247 = shalt.err (!%p4244_p7)
}
  0x13   :  { %s4413_s11 = smov 256   ;;  %s4414_s12 = smov 16  }
  0x14   :  { %38 = dma.hbm_to_vmem [thread:$0]  %s4605_s1, 28672, %s33_s25, [#allocation6], %s4413_s11, %s4413_s11, %s4414_s12  }
  0x15   :  { %s4415_s15 = smov [#allocation8]   ;;  %s4416_s17 = smov [#allocation11]  }
  0x16   :  { %s54_s16 = sshll.u32 %s4415_s15, 4  ;;  %s76_s18 = sshll.u32 %s4416_s17, 4  ;;  %s55_s16 = int_to_ptr.vmem [resolvable:$true] %s54_s16  ;;  %s77_s18 = int_to_ptr.vmem [resolvable:$true] %s76_s18 }
  0x17   :  { %s4248_s21 = scalar_lea.hbm %s4607_s3, 16384 }
  0x18   :  { %p4249_p8 = scmp.ne.s32.totalorder %s4607_s3, %s4248_s21  ;;  %p4252_p9 = scmp.lt.u32.totalorder %s4248_s21, %s4607_s3 }
  0x1a   :  { %p4254_p10 = pnand %p4252_p9, %p4249_p8 }
  0x1c   :  { %4257 = shalt.err (!%p4254_p10)
}
  0x1d   :  { %s4258_s1 = scalar_lea.vmem %s55_s16, 16384  ;;  %p4263_p12 = scmp.lt.s32.totalorder %s55_s16, %s55_s16 }
  0x1e   :  { %p4259_p11 = scmp.ne.s32.totalorder %s55_s16, %s4258_s1  ;;  %p4264_p13 = scmp.lt.s32.totalorder %s4258_s1, %s4258_s1 }
  0x20   :  { %p4265_p0 = por %p4264_p13, %p4263_p12 }
  0x22   :  { %p4266_p1 = pnand %p4265_p0, %p4259_p11 }
  0x24   :  { %4269 = shalt.err (!%p4266_p1)
}
  0x25   :  { %60 = dma.hbm_to_vmem [thread:$0]  %s4607_s3, 16384, %s55_s16, [#allocation9], %s4413_s11, %s4413_s11, %s4414_s12  }
  0x26   :  { %s4270_s30 = scalar_lea.hbm %s4609_s5, 4096 }
  0x27   :  { %p4271_p2 = scmp.ne.s32.totalorder %s4609_s5, %s4270_s30  ;;  %p4274_p3 = scmp.lt.u32.totalorder %s4270_s30, %s4609_s5 }
  0x29   :  { %p4276_p4 = pnand %p4274_p3, %p4271_p2 }
  0x2b   :  { %4279 = shalt.err (!%p4276_p4)
}
  0x2c   :  { %s4280_s14 = scalar_lea.vmem %s77_s18, 4096  ;;  %p4285_p6 = scmp.lt.s32.totalorder %s77_s18, %s77_s18 }
  0x2d   :  { %p4281_p5 = scmp.ne.s32.totalorder %s77_s18, %s4280_s14  ;;  %p4286_p7 = scmp.lt.s32.totalorder %s4280_s14, %s4280_s14 }
  0x2f   :  { %p4287_p8 = por %p4286_p7, %p4285_p6 }
  0x31   :  { %p4288_p9 = pnand %p4287_p8, %p4281_p5 }
  0x33   :  { %4291 = shalt.err (!%p4288_p9)
}
  0x34   :  { %s4417_s3 = smov 64   ;;  %s4418_s11 = smov 4  }
  0x35   :  { %82 = dma.hbm_to_vmem [thread:$0]  %s4609_s5, 4096, %s77_s18, [#allocation12], %s4417_s3, %s4417_s3, %s4418_s11  }
  0x36   :  { %s4419_s16 = smov [#allocation2]   ;;  %s4420_s19 = smov [#allocation7]  }
  0x37   :  { %s23_s17 = sshll.u32 %s4419_s16, 4  ;;  %s45_s20 = sshll.u32 %s4420_s19, 4  ;;  %s24_s17 = int_to_ptr.vmem [resolvable:$true] %s23_s17  ;;  %s46_s20 = int_to_ptr.vmem [resolvable:$true] %s45_s20 }
  0x38   :  { %s4292_s23 = scalar_lea.hbm %s4604_s0, 448 }
  0x39   :  { %p4293_p10 = scmp.ne.s32.totalorder %s4604_s0, %s4292_s23  ;;  %p4296_p11 = scmp.lt.u32.totalorder %s4292_s23, %s4604_s0 }
  0x3b   :  { %p4298_p12 = pnand %p4296_p11, %p4293_p10 }
  0x3d   :  { %4301 = shalt.err (!%p4298_p12)
}
  0x3e   :  { %s4302_s5 = scalar_lea.vmem %s24_s17, 448  ;;  %p4307_p0 = scmp.lt.s32.totalorder %s24_s17, %s24_s17 }
  0x3f   :  { %p4303_p13 = scmp.ne.s32.totalorder %s24_s17, %s4302_s5  ;;  %p4308_p1 = scmp.lt.s32.totalorder %s4302_s5, %s4302_s5 }
  0x41   :  { %p4309_p2 = por %p4308_p1, %p4307_p0 }
  0x43   :  { %p4310_p3 = pnand %p4309_p2, %p4303_p13 }
  0x45   :  { %4313 = shalt.err (!%p4310_p3)
}
  0x46   :  { %26 = dma.hbm_to_vmem [thread:$0]  %s4604_s0, 448, %s24_s17, [#allocation3]  }
  0x47   :  { %s4314_s30 = scalar_lea.hbm %s4606_s2, 64 }
  0x48   :  { %p4315_p4 = scmp.ne.s32.totalorder %s4606_s2, %s4314_s30  ;;  %p4318_p5 = scmp.lt.u32.totalorder %s4314_s30, %s4606_s2 }
  0x4a   :  { %p4320_p6 = pnand %p4318_p5, %p4315_p4 }
  0x4c   :  { %4323 = shalt.err (!%p4320_p6)
}
  0x4d   :  { %s4324_s14 = scalar_lea.vmem %s46_s20, 64  ;;  %p4329_p8 = scmp.lt.s32.totalorder %s46_s20, %s46_s20 }
  0x4e   :  { %p4325_p7 = scmp.ne.s32.totalorder %s46_s20, %s4324_s14  ;;  %p4330_p9 = scmp.lt.s32.totalorder %s4324_s14, %s4324_s14 }
  0x50   :  { %p4331_p10 = por %p4330_p9, %p4329_p8 }
  0x52   :  { %p4332_p11 = pnand %p4331_p10, %p4325_p7 }
  0x54   :  { %4335 = shalt.err (!%p4332_p11)
}
  0x55   :  { %48 = dma.hbm_to_vmem [thread:$0]  %s4606_s2, 64, %s46_s20, [#allocation6]  }
  0x56   :  { %s4421_s11 = smov [#allocation10]   ;;  %s4422_s15 = smov [#allocation13]  }
  0x57   :  { %s67_s12 = sshll.u32 %s4421_s11, 4  ;;  %s89_s16 = sshll.u32 %s4422_s15, 4  ;;  %s68_s12 = int_to_ptr.vmem [resolvable:$true] %s67_s12  ;;  %s90_s16 = int_to_ptr.vmem [resolvable:$true] %s89_s16 }
  0x58   :  { %s4336_s21 = scalar_lea.hbm %s4608_s4, 64 }
  0x59   :  { %p4337_p12 = scmp.ne.s32.totalorder %s4608_s4, %s4336_s21  ;;  %p4340_p13 = scmp.lt.u32.totalorder %s4336_s21, %s4608_s4 }
  0x5b   :  { %p4342_p0 = pnand %p4340_p13, %p4337_p12 }
  0x5d   :  { %4345 = shalt.err (!%p4342_p0)
}
  0x5e   :  { %s4346_s2 = scalar_lea.vmem %s68_s12, 64  ;;  %p4351_p2 = scmp.lt.s32.totalorder %s68_s12, %s68_s12 }
  0x5f   :  { %p4347_p1 = scmp.ne.s32.totalorder %s68_s12, %s4346_s2  ;;  %p4352_p3 = scmp.lt.s32.totalorder %s4346_s2, %s4346_s2 }
  0x61   :  { %p4353_p4 = por %p4352_p3, %p4351_p2 }
  0x63   :  { %p4354_p5 = pnand %p4353_p4, %p4347_p1 }
  0x65   :  { %4357 = shalt.err (!%p4354_p5)
}
  0x66   :  { %70 = dma.hbm_to_vmem [thread:$0]  %s4608_s4, 64, %s68_s12, [#allocation9]  }
  0x67   :  { %s4358_s18 = scalar_lea.hbm %s4610_s6, 16 }
  0x68   :  { %p4359_p6 = scmp.ne.s32.totalorder %s4610_s6, %s4358_s18  ;;  %p4362_p7 = scmp.lt.u32.totalorder %s4358_s18, %s4610_s6 }
  0x6a   :  { %p4364_p8 = pnand %p4362_p7, %p4359_p6 }
  0x6c   :  { %4367 = shalt.err (!%p4364_p8)
}
  0x6d   :  { %s4368_s8 = scalar_lea.vmem %s90_s16, 16  ;;  %s4372_s9 = scalar_lea.vmem %s90_s16, 32 }
  0x6e   :  { %p4369_p9 = scmp.ne.s32.totalorder %s90_s16, %s4368_s8  ;;  %p4373_p10 = scmp.lt.s32.totalorder %s90_s16, %s90_s16 }
  0x6f   :  { %p4374_p11 = scmp.lt.s32.totalorder %s4372_s9, %s4368_s8 }
  0x71   :  { %p4375_p12 = por %p4374_p11, %p4373_p10 }
  0x73   :  { %p4376_p13 = pnand %p4375_p12, %p4369_p9 }
  0x75   :  { %4379 = shalt.err (!%p4376_p13)
}
  0x76   :  { %92 = dma.hbm_to_vmem [thread:$0]  %s4610_s6, 16, %s90_s16, [#allocation12]  }
  0x77   :  { %4402 = dma.done.wait [#allocation3], 448  }
  0x78   :  { %4403 = vsyncadd [#allocation3], 4294966848 }
  0x79   :  { %4404 = dma.done.wait [#allocation6], 28736  }
  0x7a   :  { %4405 = vsyncadd [#allocation6], 4294938560 }
  0x7b   :  { %4406 = dma.done.wait [#allocation9], 16448  }
  0x7c   :  { %4407 = vsyncadd [#allocation9], 4294950848 }
  0x7d   :  { %4408 = dma.done.wait [#allocation12], 4112  }
  0x7e   :  { %4409 = vsyncadd [#allocation12], 4294963184  ;;  %v3659_v0 = vld [vmem:[#allocation5 + $0x4] ss:$16 sps:$4 sm:$0xff]   ;;  %v3661_v1 = vld [vmem:[#allocation5 + $0xc] ss:$16 sps:$4 sm:$0xff]  }
  0x7f   :  { %1510 = vmatprep.subr.bf16.mxu0 %v3659_v0  ;;  %v3663_v2 = vld [vmem:[#allocation5] ss:$16 sps:$4 sm:$0xff]   ;;  %v3664_v3 = vld [vmem:[#allocation5 + $0x8] ss:$16 sps:$4 sm:$0xff]   ;;  %1674 = vmatprep.subr.bf16.mxu1 %v3661_v1  ;;  %v3665_v4 = vld [vmem:[#allocation5 + $0x24] ss:$16 sps:$4 sm:$0xff]  }
  0x80   :  { %1511 = vmatpush1.bf16.msra.mxu0 %v3663_v2  ;;  %1675 = vmatpush1.bf16.msra.mxu1 %v3664_v3  ;;  %v3667_v5 = vld [vmem:[#allocation5 + $0x2c] ss:$16 sps:$4 sm:$0xff]   ;;  %v3669_v6 = vld [vmem:[#allocation5 + $0x20] ss:$16 sps:$4 sm:$0xff]   ;;  %v3670_v7 = vld [vmem:[#allocation5 + $0x28] ss:$16 sps:$4 sm:$0xff]  }
  0x81   :  { %1512 = vmatprep.subr.bf16.mxu0 %v3665_v4  ;;  %1676 = vmatprep.subr.bf16.mxu1 %v3667_v5  ;;  %v3671_v8 = vld [vmem:[#allocation5 + $0x44] ss:$16 sps:$4 sm:$0xff]   ;;  %v3673_v9 = vld [vmem:[#allocation5 + $0x4c] ss:$16 sps:$4 sm:$0xff]   ;;  %v3675_v10 = vld [vmem:[#allocation5 + $0x40] ss:$16 sps:$4 sm:$0xff]  }
  0x82   :  { %v3676_v11 = vld [vmem:[#allocation5 + $0x48] ss:$16 sps:$4 sm:$0xff]   ;;  %v3677_v12 = vld [vmem:[#allocation5 + $0x64] ss:$16 sps:$4 sm:$0xff]   ;;  %v3679_v13 = vld [vmem:[#allocation5 + $0x6c] ss:$16 sps:$4 sm:$0xff]  }
  0x83   :  { %v3681_v14 = vld [vmem:[#allocation5 + $0x60] ss:$16 sps:$4 sm:$0xff]   ;;  %v3682_v15 = vld [vmem:[#allocation5 + $0x68] ss:$16 sps:$4 sm:$0xff]   ;;  %v3683_v16 = vld [vmem:[#allocation5 + $0x84] ss:$16 sps:$4 sm:$0xff]  }
  0x84   :  { %1513 = vmatpush1.bf16.msra.mxu0 %v3669_v6  ;;  %1677 = vmatpush1.bf16.msra.mxu1 %v3670_v7  ;;  %v3685_v17 = vld [vmem:[#allocation5 + $0x8c] ss:$16 sps:$4 sm:$0xff]   ;;  %v3687_v18 = vld [vmem:[#allocation5 + $0x80] ss:$16 sps:$4 sm:$0xff]   ;;  %v3688_v19 = vld [vmem:[#allocation5 + $0x88] ss:$16 sps:$4 sm:$0xff]  }
  0x85   :  { %1514 = vmatprep.subr.bf16.mxu0 %v3671_v8  ;;  %1678 = vmatprep.subr.bf16.mxu1 %v3673_v9  ;;  %v3689_v20 = vld [vmem:[#allocation5 + $0xa4] ss:$16 sps:$4 sm:$0xff]   ;;  %v3691_v21 = vld [vmem:[#allocation5 + $0xac] ss:$16 sps:$4 sm:$0xff]   ;;  %v3693_v22 = vld [vmem:[#allocation5 + $0xa0] ss:$16 sps:$4 sm:$0xff]  }
  0x86   :  { %v3694_v23 = vld [vmem:[#allocation5 + $0xa8] ss:$16 sps:$4 sm:$0xff]   ;;  %v3695_v24 = vld [vmem:[#allocation5 + $0xc4] ss:$16 sps:$4 sm:$0xff]   ;;  %v3697_v25 = vld [vmem:[#allocation5 + $0xcc] ss:$16 sps:$4 sm:$0xff]  }
  0x87   :  { %v3699_v26 = vld [vmem:[#allocation5 + $0xc0] ss:$16 sps:$4 sm:$0xff]   ;;  %v3700_v27 = vld [vmem:[#allocation5 + $0xc8] ss:$16 sps:$4 sm:$0xff]   ;;  %v3701_v28 = vld [vmem:[#allocation5 + $0xe4] ss:$16 sps:$4 sm:$0xff]  }
  0x88   :  { %1515 = vmatpush1.bf16.msra.mxu0 %v3675_v10  ;;  %1679 = vmatpush1.bf16.msra.mxu1 %v3676_v11  ;;  %v3703_v29 = vld [vmem:[#allocation5 + $0xec] ss:$16 sps:$4 sm:$0xff]   ;;  %v3705_v30 = vld [vmem:[#allocation5 + $0xe0] ss:$16 sps:$4 sm:$0xff]   ;;  %v3706_v31 = vld [vmem:[#allocation5 + $0xe8] ss:$16 sps:$4 sm:$0xff]  }
  0x89   :  { %1516 = vmatprep.subr.bf16.mxu0 %v3677_v12  ;;  %1680 = vmatprep.subr.bf16.mxu1 %v3679_v13  ;;  %v3707_v32 = vld [vmem:[#allocation5 + $0x104] ss:$16 sps:$4 sm:$0xff]   ;;  %v3709_v33 = vld [vmem:[#allocation5 + $0x10c] ss:$16 sps:$4 sm:$0xff]   ;;  %v3711_v34 = vld [vmem:[#allocation5 + $0x100] ss:$16 sps:$4 sm:$0xff]  }
  0x8a   :  { %v3712_v35 = vld [vmem:[#allocation5 + $0x108] ss:$16 sps:$4 sm:$0xff]   ;;  %v3713_v36 = vld [vmem:[#allocation5 + $0x124] ss:$16 sps:$4 sm:$0xff]   ;;  %v3715_v37 = vld [vmem:[#allocation5 + $0x12c] ss:$16 sps:$4 sm:$0xff]  }
  0x8b   :  { %v3717_v38 = vld [vmem:[#allocation5 + $0x120] ss:$16 sps:$4 sm:$0xff]   ;;  %v3718_v39 = vld [vmem:[#allocation5 + $0x128] ss:$16 sps:$4 sm:$0xff]   ;;  %v3719_v40 = vld [vmem:[#allocation5 + $0x144] ss:$16 sps:$4 sm:$0xff]  }
  0x8c   :  { %1517 = vmatpush1.bf16.msra.mxu0 %v3681_v14  ;;  %1681 = vmatpush1.bf16.msra.mxu1 %v3682_v15  ;;  %v3721_v41 = vld [vmem:[#allocation5 + $0x14c] ss:$16 sps:$4 sm:$0xff]   ;;  %v3723_v42 = vld [vmem:[#allocation5 + $0x140] ss:$16 sps:$4 sm:$0xff]   ;;  %v3724_v43 = vld [vmem:[#allocation5 + $0x148] ss:$16 sps:$4 sm:$0xff]  }
  0x8d   :  { %1518 = vmatprep.subr.bf16.mxu0 %v3683_v16  ;;  %1682 = vmatprep.subr.bf16.mxu1 %v3685_v17  ;;  %v3725_v44 = vld [vmem:[#allocation5 + $0x164] ss:$16 sps:$4 sm:$0xff]   ;;  %v3727_v45 = vld [vmem:[#allocation5 + $0x16c] ss:$16 sps:$4 sm:$0xff]   ;;  %v3729_v47 = vld [vmem:[#allocation5 + $0x160] ss:$16 sps:$4 sm:$0xff]  }
  0x8e   :  { %v115_v46 = vld [vmem:[#allocation2] sm:$0xff]  ;;  %v3733_v51 = vld [vmem:[#allocation5 + $0x18c] ss:$16 sps:$4 sm:$0xff]   ;;  %v3735_v52 = vld [vmem:[#allocation5 + $0x180] ss:$16 sps:$4 sm:$0xff]   ;;  %s4424_s6 = smov [#allocation14]  }
  0x8f   :  { %v3171_v48 = vcombine.high %v115_v46, %v115_v46  ;;  %v3730_v49 = vld [vmem:[#allocation5 + $0x168] ss:$16 sps:$4 sm:$0xff]   ;;  %v3731_v50 = vld [vmem:[#allocation5 + $0x184] ss:$16 sps:$4 sm:$0xff]   ;;  %v3739_v55 = vld [vmem:[#allocation5 + $0x1ac] ss:$16 sps:$4 sm:$0xff]   ;;  %v3170_v4 = vcombine.low %v115_v46, %v115_v46 }
  0x90   :  { %1519 = vmatpush1.bf16.msra.mxu0 %v3687_v18  ;;  %1683 = vmatpush1.bf16.msra.mxu1 %v3688_v19  ;;  %v3736_v53 = vld [vmem:[#allocation5 + $0x188] ss:$16 sps:$4 sm:$0xff]   ;;  %v3737_v54 = vld [vmem:[#allocation5 + $0x1a4] ss:$16 sps:$4 sm:$0xff]   ;;  %v3741_v56 = vld [vmem:[#allocation5 + $0x1a0] ss:$16 sps:$4 sm:$0xff]  }
  0x91   :  { %1520 = vmatprep.subr.bf16.mxu0 %v3689_v20  ;;  %1684 = vmatprep.subr.bf16.mxu1 %v3691_v21  ;;  %v3742_v57 = vld [vmem:[#allocation5 + $0x1a8] ss:$16 sps:$4 sm:$0xff]   ;;  %v3743_v58 = vld [vmem:[#allocation5 + $0x1c4] ss:$16 sps:$4 sm:$0xff]   ;;  %v3745_v59 = vld [vmem:[#allocation5 + $0x1cc] ss:$16 sps:$4 sm:$0xff]  }
  0x92   :  { %1542 = vmatprep.mubr.bf16.mxu0 %v3171_v48  ;;  %1706 = vmatprep.mubr.bf16.mxu1 %v3171_v48  ;;  %v3747_v60 = vld [vmem:[#allocation5 + $0x1c0] ss:$16 sps:$4 sm:$0xff]   ;;  %v3748_v61 = vld [vmem:[#allocation5 + $0x1c8] ss:$16 sps:$4 sm:$0xff]   ;;  %v3749_v62 = vld [vmem:[#allocation5 + $0x1e4] ss:$16 sps:$4 sm:$0xff]  }
  0x93   :  { %v3751_v63 = vld [vmem:[#allocation5 + $0x1ec] ss:$16 sps:$4 sm:$0xff]   ;;  %v3753_v0 = vld [vmem:[#allocation5 + $0x1e0] ss:$16 sps:$4 sm:$0xff]   ;;  %v3754_v1 = vld [vmem:[#allocation5 + $0x1e8] ss:$16 sps:$4 sm:$0xff]  }
  0x94   :  { %1521 = vmatpush1.bf16.msra.mxu0 %v3693_v22  ;;  %1685 = vmatpush1.bf16.msra.mxu1 %v3694_v23  ;;  %v3759_v2 = vld [vmem:[#allocation5 + $0x204] ss:$16 sps:$4 sm:$0xff]   ;;  %v3762_v3 = vld [vmem:[#allocation5 + $0x20c] ss:$16 sps:$4 sm:$0xff]   ;;  %v3757_v5 = vld [vmem:[#allocation5 + $0x200] ss:$16 sps:$4 sm:$0xff]  }
  0x95   :  { %1522 = vmatprep.subr.bf16.mxu0 %v3695_v24  ;;  %1686 = vmatprep.subr.bf16.mxu1 %v3697_v25  ;;  %v3760_v6 = vld [vmem:[#allocation5 + $0x208] ss:$16 sps:$4 sm:$0xff]   ;;  %v3765_v7 = vld [vmem:[#allocation5 + $0x224] ss:$16 sps:$4 sm:$0xff]   ;;  %v3768_v8 = vld [vmem:[#allocation5 + $0x22c] ss:$16 sps:$4 sm:$0xff]  }
  0x96   :  { %v3763_v9 = vld [vmem:[#allocation5 + $0x220] ss:$16 sps:$4 sm:$0xff]   ;;  %v3766_v10 = vld [vmem:[#allocation5 + $0x228] ss:$16 sps:$4 sm:$0xff]   ;;  %v3771_v11 = vld [vmem:[#allocation5 + $0x244] ss:$16 sps:$4 sm:$0xff]  }
  0x97   :  { %v3774_v12 = vld [vmem:[#allocation5 + $0x24c] ss:$16 sps:$4 sm:$0xff]   ;;  %v3769_v13 = vld [vmem:[#allocation5 + $0x240] ss:$16 sps:$4 sm:$0xff]   ;;  %v3772_v14 = vld [vmem:[#allocation5 + $0x248] ss:$16 sps:$4 sm:$0xff]  }
  0x98   :  { %1523 = vmatpush1.bf16.msra.mxu0 %v3699_v26  ;;  %1687 = vmatpush1.bf16.msra.mxu1 %v3700_v27  ;;  %v3777_v15 = vld [vmem:[#allocation5 + $0x264] ss:$16 sps:$4 sm:$0xff]   ;;  %v3780_v16 = vld [vmem:[#allocation5 + $0x26c] ss:$16 sps:$4 sm:$0xff]   ;;  %v3775_v17 = vld [vmem:[#allocation5 + $0x260] ss:$16 sps:$4 sm:$0xff]  }
  0x99   :  { %1524 = vmatprep.subr.bf16.mxu0 %v3701_v28  ;;  %1688 = vmatprep.subr.bf16.mxu1 %v3703_v29  ;;  %v3778_v18 = vld [vmem:[#allocation5 + $0x268] ss:$16 sps:$4 sm:$0xff]   ;;  %v3783_v19 = vld [vmem:[#allocation5 + $0x284] ss:$16 sps:$4 sm:$0xff]   ;;  %v3786_v20 = vld [vmem:[#allocation5 + $0x28c] ss:$16 sps:$4 sm:$0xff]  }
  0x9a   :  { %v3781_v21 = vld [vmem:[#allocation5 + $0x280] ss:$16 sps:$4 sm:$0xff]   ;;  %v3784_v22 = vld [vmem:[#allocation5 + $0x288] ss:$16 sps:$4 sm:$0xff]   ;;  %v3789_v23 = vld [vmem:[#allocation5 + $0x2a4] ss:$16 sps:$4 sm:$0xff]  }
  0x9b   :  { %v3792_v24 = vld [vmem:[#allocation5 + $0x2ac] ss:$16 sps:$4 sm:$0xff]   ;;  %v3787_v25 = vld [vmem:[#allocation5 + $0x2a0] ss:$16 sps:$4 sm:$0xff]   ;;  %v3790_v26 = vld [vmem:[#allocation5 + $0x2a8] ss:$16 sps:$4 sm:$0xff]  }
  0x9c   :  { %1525 = vmatpush1.bf16.msra.mxu0 %v3705_v30  ;;  %1689 = vmatpush1.bf16.msra.mxu1 %v3706_v31  ;;  %v3795_v27 = vld [vmem:[#allocation5 + $0x2c4] ss:$16 sps:$4 sm:$0xff]   ;;  %v3798_v28 = vld [vmem:[#allocation5 + $0x2cc] ss:$16 sps:$4 sm:$0xff]   ;;  %v3793_v31 = vld [vmem:[#allocation5 + $0x2c0] ss:$16 sps:$4 sm:$0xff]  }
  0x9d   :  { %1526 = vmatprep.subr.bf16.mxu0 %v3707_v32  ;;  %1690 = vmatprep.subr.bf16.mxu1 %v3709_v33  ;;  %v4549_v29 = vld [vmem:[#allocation2 + $0x8] sm:$0xff]  ;;  %v3796_v32 = vld [vmem:[#allocation5 + $0x2c8] ss:$16 sps:$4 sm:$0xff]   ;;  %v3801_v33 = vld [vmem:[#allocation5 + $0x2e4] ss:$16 sps:$4 sm:$0xff]   ;;  %s3158_s13 = sshll.u32 %s4424_s6, 4  ;;  %s3159_s13 = int_to_ptr.vmem [resolvable:$true] %s3158_s13 }
  0x9e   :  { %v3173_v30 = vcombine.high %v4549_v29, %v4549_v29  ;;  %v3822_v46 = vld [vmem:[#allocation5 + $0x34c] ss:$16 sps:$4 sm:$0xff]   ;;  %v3820_v48 = vld [vmem:[#allocation5 + $0x348] ss:$16 sps:$4 sm:$0xff]   ;;  %s4380_s14 = scalar_lea.vmem %s3159_s13, 128  ;;  %p4385_p1 = scmp.lt.s32.totalorder %s3159_s13, %s3159_s13 }
  0x9f   :  { %p4381_p0 = scmp.ne.s32.totalorder %s3159_s13, %s4380_s14  ;;  %p4386_p2 = scmp.lt.s32.totalorder %s4380_s14, %s4380_s14 }
  0xa0   :  { %1527 = vmatpush1.bf16.msra.mxu0 %v3711_v34  ;;  %1691 = vmatpush1.bf16.msra.mxu1 %v3712_v35  ;;  %v3804_v34 = vld [vmem:[#allocation5 + $0x2ec] ss:$16 sps:$4 sm:$0xff]   ;;  %v3799_v35 = vld [vmem:[#allocation5 + $0x2e0] ss:$16 sps:$4 sm:$0xff]  }
  0xa1   :  { %1528 = vmatprep.subr.bf16.mxu0 %v3713_v36  ;;  %1692 = vmatprep.subr.bf16.mxu1 %v3715_v37  ;;  %v3802_v36 = vld [vmem:[#allocation5 + $0x2e8] ss:$16 sps:$4 sm:$0xff]   ;;  %v3807_v37 = vld [vmem:[#allocation5 + $0x304] ss:$16 sps:$4 sm:$0xff]   ;;  %p4387_p3 = por %p4386_p2, %p4385_p1 }
  0xa3   :  { %p4388_p4 = pnand %p4387_p3, %p4381_p0 }
  0xa4   :  { %1529 = vmatpush1.bf16.msra.mxu0 %v3717_v38  ;;  %1693 = vmatpush1.bf16.msra.mxu1 %v3718_v39  ;;  %v3810_v38 = vld [vmem:[#allocation5 + $0x30c] ss:$16 sps:$4 sm:$0xff]   ;;  %v3805_v39 = vld [vmem:[#allocation5 + $0x300] ss:$16 sps:$4 sm:$0xff]  }
  0xa5   :  { %1530 = vmatprep.subr.bf16.mxu0 %v3719_v40  ;;  %1694 = vmatprep.subr.bf16.mxu1 %v3721_v41  ;;  %v3808_v40 = vld [vmem:[#allocation5 + $0x308] ss:$16 sps:$4 sm:$0xff]   ;;  %v3813_v41 = vld [vmem:[#allocation5 + $0x324] ss:$16 sps:$4 sm:$0xff]  }
  0xa8   :  { %1531 = vmatpush1.bf16.msra.mxu0 %v3723_v42  ;;  %1695 = vmatpush1.bf16.msra.mxu1 %v3724_v43  ;;  %v3816_v42 = vld [vmem:[#allocation5 + $0x32c] ss:$16 sps:$4 sm:$0xff]   ;;  %v3811_v43 = vld [vmem:[#allocation5 + $0x320] ss:$16 sps:$4 sm:$0xff]  }
  0xa9   :  { %1532 = vmatprep.subr.bf16.mxu0 %v3725_v44  ;;  %1696 = vmatprep.subr.bf16.mxu1 %v3727_v45  ;;  %v3814_v44 = vld [vmem:[#allocation5 + $0x328] ss:$16 sps:$4 sm:$0xff]   ;;  %v3819_v45 = vld [vmem:[#allocation5 + $0x344] ss:$16 sps:$4 sm:$0xff]  }
  0xac   :  { %1533 = vmatpush1.bf16.msra.mxu0 %v3729_v47  ;;  %1697 = vmatpush1.bf16.msra.mxu1 %v3730_v49  ;;  %v3817_v47 = vld [vmem:[#allocation5 + $0x340] ss:$16 sps:$4 sm:$0xff]   ;;  %v3825_v49 = vld [vmem:[#allocation5 + $0x364] ss:$16 sps:$4 sm:$0xff]  }
  0xad   :  { %1534 = vmatprep.subr.bf16.mxu0 %v3731_v50  ;;  %1698 = vmatprep.subr.bf16.mxu1 %v3733_v51  ;;  %v3828_v50 = vld [vmem:[#allocation5 + $0x36c] ss:$16 sps:$4 sm:$0xff]   ;;  %v3823_v51 = vld [vmem:[#allocation5 + $0x360] ss:$16 sps:$4 sm:$0xff]  }
  0xb0   :  { %1535 = vmatpush1.bf16.msra.mxu0 %v3735_v52  ;;  %1699 = vmatpush1.bf16.msra.mxu1 %v3736_v53  ;;  %v3826_v52 = vld [vmem:[#allocation5 + $0x368] ss:$16 sps:$4 sm:$0xff]   ;;  %v3831_v53 = vld [vmem:[#allocation5 + $0x384] ss:$16 sps:$4 sm:$0xff]  }
  0xb1   :  { %1536 = vmatprep.subr.bf16.mxu0 %v3737_v54  ;;  %1700 = vmatprep.subr.bf16.mxu1 %v3739_v55  ;;  %v3834_v54 = vld [vmem:[#allocation5 + $0x38c] ss:$16 sps:$4 sm:$0xff]   ;;  %v3829_v55 = vld [vmem:[#allocation5 + $0x380] ss:$16 sps:$4 sm:$0xff]  }
  0xb4   :  { %1537 = vmatpush1.bf16.msra.mxu0 %v3741_v56  ;;  %1701 = vmatpush1.bf16.msra.mxu1 %v3742_v57  ;;  %v3832_v56 = vld [vmem:[#allocation5 + $0x388] ss:$16 sps:$4 sm:$0xff]   ;;  %v3837_v57 = vld [vmem:[#allocation5 + $0x3a4] ss:$16 sps:$4 sm:$0xff]  }
  0xb5   :  { %1538 = vmatprep.subr.bf16.mxu0 %v3743_v58  ;;  %1702 = vmatprep.subr.bf16.mxu1 %v3745_v59  ;;  %v3840_v58 = vld [vmem:[#allocation5 + $0x3ac] ss:$16 sps:$4 sm:$0xff]   ;;  %v3835_v59 = vld [vmem:[#allocation5 + $0x3a0] ss:$16 sps:$4 sm:$0xff]  }
  0xb8   :  { %1539 = vmatpush1.bf16.msra.mxu0 %v3747_v60  ;;  %1703 = vmatpush1.bf16.msra.mxu1 %v3748_v61  ;;  %v3838_v60 = vld [vmem:[#allocation5 + $0x3a8] ss:$16 sps:$4 sm:$0xff]   ;;  %v3843_v61 = vld [vmem:[#allocation5 + $0x3c4] ss:$16 sps:$4 sm:$0xff]  }
  0xb9   :  { %1540 = vmatprep.subr.bf16.mxu0 %v3749_v62  ;;  %1704 = vmatprep.subr.bf16.mxu1 %v3751_v63  ;;  %v3846_v62 = vld [vmem:[#allocation5 + $0x3cc] ss:$16 sps:$4 sm:$0xff]   ;;  %v3841_v63 = vld [vmem:[#allocation5 + $0x3c0] ss:$16 sps:$4 sm:$0xff]  }
  0xbc   :  { %1541 = vmatpush1.bf16.msra.mxu0 %v3753_v0  ;;  %1705 = vmatpush1.bf16.msra.mxu1 %v3754_v1  ;;  %v3844_v0 = vld [vmem:[#allocation5 + $0x3c8] ss:$16 sps:$4 sm:$0xff]   ;;  %v3849_v1 = vld [vmem:[#allocation5 + $0x3e4] ss:$16 sps:$4 sm:$0xff]  }
  0xbd   :  { %1551 = vmatprep.subr.bf16.mxu0 %v3759_v2  ;;  %1715 = vmatprep.subr.bf16.mxu1 %v3762_v3  ;;  %v3852_v2 = vld [vmem:[#allocation5 + $0x3ec] ss:$16 sps:$4 sm:$0xff]   ;;  %v3847_v3 = vld [vmem:[#allocation5 + $0x3e0] ss:$16 sps:$4 sm:$0xff]  }
  0xbf   :  { %1543 = vmatmul.mubr.bf16.vlgmr.msra.gmra.mrb[0].mxu0 %v3170_v4  ;;  %1707 = vmatmul.mubr.bf16.vlgmr.msra.gmra.mrb[0].mxu1 %v3170_v4  ;;  %v3850_v4 = vld [vmem:[#allocation5 + $0x3e8] ss:$16 sps:$4 sm:$0xff]  }
  0xc0   :  { %1552 = vmatpush1.bf16.msra.mxu0 %v3757_v5  ;;  %1716 = vmatpush1.bf16.msra.mxu1 %v3760_v6  ;;  %v3857_v5 = vld [vmem:[#allocation5 + $0x404] ss:$16 sps:$4 sm:$0xff]   ;;  %v3860_v6 = vld [vmem:[#allocation5 + $0x40c] ss:$16 sps:$4 sm:$0xff]  }
  0xc1   :  { %1553 = vmatprep.subr.bf16.mxu0 %v3765_v7  ;;  %1717 = vmatprep.subr.bf16.mxu1 %v3768_v8  ;;  %v3172_v7 = vcombine.low %v4549_v29, %v4549_v29  ;;  %v3855_v8 = vld [vmem:[#allocation5 + $0x400] ss:$16 sps:$4 sm:$0xff]   ;;  %v3890_v29 = vld [vmem:[#allocation5 + $0x4ac] ss:$16 sps:$4 sm:$0xff]  }
  0xc2   :  { %1583 = vmatprep.mubr.bf16.mxu0 %v3173_v30  ;;  %1747 = vmatprep.mubr.bf16.mxu1 %v3173_v30  ;;  %v3885_v30 = vld [vmem:[#allocation5 + $0x4a0] ss:$16 sps:$4 sm:$0xff]  }
  0xc4   :  { %1554 = vmatpush1.bf16.msra.mxu0 %v3763_v9  ;;  %1718 = vmatpush1.bf16.msra.mxu1 %v3766_v10  ;;  %v3858_v9 = vld [vmem:[#allocation5 + $0x408] ss:$16 sps:$4 sm:$0xff]   ;;  %v3863_v10 = vld [vmem:[#allocation5 + $0x424] ss:$16 sps:$4 sm:$0xff]  }
  0xc5   :  { %1555 = vmatprep.subr.bf16.mxu0 %v3771_v11  ;;  %1719 = vmatprep.subr.bf16.mxu1 %v3774_v12  ;;  %v4555_v11 = vld [vmem:[#allocation2 + $0x10] sm:$0xff]  ;;  %v3866_v12 = vld [vmem:[#allocation5 + $0x42c] ss:$16 sps:$4 sm:$0xff]  }
  0xc8   :  { %1556 = vmatpush1.bf16.msra.mxu0 %v3769_v13  ;;  %1720 = vmatpush1.bf16.msra.mxu1 %v3772_v14  ;;  %v3175_v13 = vcombine.high %v4555_v11, %v4555_v11  ;;  %v3861_v14 = vld [vmem:[#allocation5 + $0x420] ss:$16 sps:$4 sm:$0xff]  }
  0xc9   :  { %1557 = vmatprep.subr.bf16.mxu0 %v3777_v15  ;;  %1721 = vmatprep.subr.bf16.mxu1 %v3780_v16  ;;  %v3864_v15 = vld [vmem:[#allocation5 + $0x428] ss:$16 sps:$4 sm:$0xff]   ;;  %v3869_v16 = vld [vmem:[#allocation5 + $0x444] ss:$16 sps:$4 sm:$0xff]  }
  0xcc   :  { %1558 = vmatpush1.bf16.msra.mxu0 %v3775_v17  ;;  %1722 = vmatpush1.bf16.msra.mxu1 %v3778_v18  ;;  %v3872_v17 = vld [vmem:[#allocation5 + $0x44c] ss:$16 sps:$4 sm:$0xff]   ;;  %v3867_v18 = vld [vmem:[#allocation5 + $0x440] ss:$16 sps:$4 sm:$0xff]  }
  0xcd   :  { %1559 = vmatprep.subr.bf16.mxu0 %v3783_v19  ;;  %1723 = vmatprep.subr.bf16.mxu1 %v3786_v20  ;;  %v3870_v19 = vld [vmem:[#allocation5 + $0x448] ss:$16 sps:$4 sm:$0xff]   ;;  %v3875_v20 = vld [vmem:[#allocation5 + $0x464] ss:$16 sps:$4 sm:$0xff]  }
  0xd0   :  { %1560 = vmatpush1.bf16.msra.mxu0 %v3781_v21  ;;  %1724 = vmatpush1.bf16.msra.mxu1 %v3784_v22  ;;  %v3878_v21 = vld [vmem:[#allocation5 + $0x46c] ss:$16 sps:$4 sm:$0xff]   ;;  %v3873_v22 = vld [vmem:[#allocation5 + $0x460] ss:$16 sps:$4 sm:$0xff]  }
  0xd1   :  { %1561 = vmatprep.subr.bf16.mxu0 %v3789_v23  ;;  %1725 = vmatprep.subr.bf16.mxu1 %v3792_v24  ;;  %v3876_v23 = vld [vmem:[#allocation5 + $0x468] ss:$16 sps:$4 sm:$0xff]   ;;  %v3881_v24 = vld [vmem:[#allocation5 + $0x484] ss:$16 sps:$4 sm:$0xff]  }
  0xd4   :  { %1562 = vmatpush1.bf16.msra.mxu0 %v3787_v25  ;;  %1726 = vmatpush1.bf16.msra.mxu1 %v3790_v26  ;;  %v3884_v25 = vld [vmem:[#allocation5 + $0x48c] ss:$16 sps:$4 sm:$0xff]   ;;  %v3879_v26 = vld [vmem:[#allocation5 + $0x480] ss:$16 sps:$4 sm:$0xff]  }
  0xd5   :  { %1563 = vmatprep.subr.bf16.mxu0 %v3795_v27  ;;  %1727 = vmatprep.subr.bf16.mxu1 %v3798_v28  ;;  %v3882_v27 = vld [vmem:[#allocation5 + $0x488] ss:$16 sps:$4 sm:$0xff]   ;;  %v3887_v28 = vld [vmem:[#allocation5 + $0x4a4] ss:$16 sps:$4 sm:$0xff]  }
  0xd8   :  { %1564 = vmatpush1.bf16.msra.mxu0 %v3793_v31  ;;  %1728 = vmatpush1.bf16.msra.mxu1 %v3796_v32  ;;  %v3888_v31 = vld [vmem:[#allocation5 + $0x4a8] ss:$16 sps:$4 sm:$0xff]   ;;  %v3893_v32 = vld [vmem:[#allocation5 + $0x4c4] ss:$16 sps:$4 sm:$0xff]  }
  0xd9   :  { %1565 = vmatprep.subr.bf16.mxu0 %v3801_v33  ;;  %1729 = vmatprep.subr.bf16.mxu1 %v3804_v34  ;;  %v3896_v33 = vld [vmem:[#allocation5 + $0x4cc] ss:$16 sps:$4 sm:$0xff]   ;;  %v3891_v34 = vld [vmem:[#allocation5 + $0x4c0] ss:$16 sps:$4 sm:$0xff]  }
  0xdc   :  { %1566 = vmatpush1.bf16.msra.mxu0 %v3799_v35  ;;  %1730 = vmatpush1.bf16.msra.mxu1 %v3802_v36  ;;  %v3894_v35 = vld [vmem:[#allocation5 + $0x4c8] ss:$16 sps:$4 sm:$0xff]   ;;  %v3899_v36 = vld [vmem:[#allocation5 + $0x4e4] ss:$16 sps:$4 sm:$0xff]  }
  0xdd   :  { %1567 = vmatprep.subr.bf16.mxu0 %v3807_v37  ;;  %1731 = vmatprep.subr.bf16.mxu1 %v3810_v38  ;;  %v3902_v37 = vld [vmem:[#allocation5 + $0x4ec] ss:$16 sps:$4 sm:$0xff]   ;;  %v3897_v38 = vld [vmem:[#allocation5 + $0x4e0] ss:$16 sps:$4 sm:$0xff]  }
  0xe0   :  { %1568 = vmatpush1.bf16.msra.mxu0 %v3805_v39  ;;  %1732 = vmatpush1.bf16.msra.mxu1 %v3808_v40  ;;  %v3900_v39 = vld [vmem:[#allocation5 + $0x4e8] ss:$16 sps:$4 sm:$0xff]   ;;  %v3905_v40 = vld [vmem:[#allocation5 + $0x504] ss:$16 sps:$4 sm:$0xff]  }
  0xe1   :  { %1569 = vmatprep.subr.bf16.mxu0 %v3813_v41  ;;  %1733 = vmatprep.subr.bf16.mxu1 %v3816_v42  ;;  %v3908_v41 = vld [vmem:[#allocation5 + $0x50c] ss:$16 sps:$4 sm:$0xff]   ;;  %v3903_v42 = vld [vmem:[#allocation5 + $0x500] ss:$16 sps:$4 sm:$0xff]  }
  0xe4   :  { %1570 = vmatpush1.bf16.msra.mxu0 %v3811_v43  ;;  %1734 = vmatpush1.bf16.msra.mxu1 %v3814_v44  ;;  %v3906_v43 = vld [vmem:[#allocation5 + $0x508] ss:$16 sps:$4 sm:$0xff]   ;;  %v3911_v44 = vld [vmem:[#allocation5 + $0x524] ss:$16 sps:$4 sm:$0xff]  }
  0xe5   :  { %1571 = vmatprep.subr.bf16.mxu0 %v3819_v45  ;;  %1735 = vmatprep.subr.bf16.mxu1 %v3822_v46  ;;  %v3914_v45 = vld [vmem:[#allocation5 + $0x52c] ss:$16 sps:$4 sm:$0xff]   ;;  %v3909_v46 = vld [vmem:[#allocation5 + $0x520] ss:$16 sps:$4 sm:$0xff]  }
  0xe8   :  { %1572 = vmatpush1.bf16.msra.mxu0 %v3817_v47  ;;  %1736 = vmatpush1.bf16.msra.mxu1 %v3820_v48  ;;  %v3912_v47 = vld [vmem:[#allocation5 + $0x528] ss:$16 sps:$4 sm:$0xff]   ;;  %v3917_v48 = vld [vmem:[#allocation5 + $0x544] ss:$16 sps:$4 sm:$0xff]  }
  0xe9   :  { %1573 = vmatprep.subr.bf16.mxu0 %v3825_v49  ;;  %1737 = vmatprep.subr.bf16.mxu1 %v3828_v50  ;;  %v3920_v49 = vld [vmem:[#allocation5 + $0x54c] ss:$16 sps:$4 sm:$0xff]   ;;  %v3915_v50 = vld [vmem:[#allocation5 + $0x540] ss:$16 sps:$4 sm:$0xff]  }
  0xec   :  { %1574 = vmatpush1.bf16.msra.mxu0 %v3823_v51  ;;  %1738 = vmatpush1.bf16.msra.mxu1 %v3826_v52  ;;  %v3918_v51 = vld [vmem:[#allocation5 + $0x548] ss:$16 sps:$4 sm:$0xff]   ;;  %v3923_v52 = vld [vmem:[#allocation5 + $0x564] ss:$16 sps:$4 sm:$0xff]  }
  0xed   :  { %1575 = vmatprep.subr.bf16.mxu0 %v3831_v53  ;;  %1739 = vmatprep.subr.bf16.mxu1 %v3834_v54  ;;  %v3926_v53 = vld [vmem:[#allocation5 + $0x56c] ss:$16 sps:$4 sm:$0xff]   ;;  %v3921_v54 = vld [vmem:[#allocation5 + $0x560] ss:$16 sps:$4 sm:$0xff]  }
  0xf0   :  { %1576 = vmatpush1.bf16.msra.mxu0 %v3829_v55  ;;  %1740 = vmatpush1.bf16.msra.mxu1 %v3832_v56  ;;  %v3924_v55 = vld [vmem:[#allocation5 + $0x568] ss:$16 sps:$4 sm:$0xff]   ;;  %v3929_v56 = vld [vmem:[#allocation5 + $0x584] ss:$16 sps:$4 sm:$0xff]  }
  0xf1   :  { %1577 = vmatprep.subr.bf16.mxu0 %v3837_v57  ;;  %1741 = vmatprep.subr.bf16.mxu1 %v3840_v58  ;;  %v3932_v57 = vld [vmem:[#allocation5 + $0x58c] ss:$16 sps:$4 sm:$0xff]   ;;  %v3927_v58 = vld [vmem:[#allocation5 + $0x580] ss:$16 sps:$4 sm:$0xff]  }
  0xf4   :  { %1578 = vmatpush1.bf16.msra.mxu0 %v3835_v59  ;;  %1742 = vmatpush1.bf16.msra.mxu1 %v3838_v60  ;;  %v3930_v59 = vld [vmem:[#allocation5 + $0x588] ss:$16 sps:$4 sm:$0xff]   ;;  %v3935_v60 = vld [vmem:[#allocation5 + $0x5a4] ss:$16 sps:$4 sm:$0xff]  }
  0xf5   :  { %1579 = vmatprep.subr.bf16.mxu0 %v3843_v61  ;;  %1743 = vmatprep.subr.bf16.mxu1 %v3846_v62  ;;  %v3938_v61 = vld [vmem:[#allocation5 + $0x5ac] ss:$16 sps:$4 sm:$0xff]   ;;  %v3933_v62 = vld [vmem:[#allocation5 + $0x5a0] ss:$16 sps:$4 sm:$0xff]  }
  0xf8   :  { %1580 = vmatpush1.bf16.msra.mxu0 %v3841_v63  ;;  %1744 = vmatpush1.bf16.msra.mxu1 %v3844_v0  ;;  %v3936_v63 = vld [vmem:[#allocation5 + $0x5a8] ss:$16 sps:$4 sm:$0xff]   ;;  %v3941_v0 = vld [vmem:[#allocation5 + $0x5c4] ss:$16 sps:$4 sm:$0xff]  }
  0xf9   :  { %1581 = vmatprep.subr.bf16.mxu0 %v3849_v1  ;;  %1745 = vmatprep.subr.bf16.mxu1 %v3852_v2  ;;  %v3944_v1 = vld [vmem:[#allocation5 + $0x5cc] ss:$16 sps:$4 sm:$0xff]   ;;  %v3939_v2 = vld [vmem:[#allocation5 + $0x5c0] ss:$16 sps:$4 sm:$0xff]  }
  0xfc   :  { %1582 = vmatpush1.bf16.msra.mxu0 %v3847_v3  ;;  %1746 = vmatpush1.bf16.msra.mxu1 %v3850_v4  ;;  %v3942_v3 = vld [vmem:[#allocation5 + $0x5c8] ss:$16 sps:$4 sm:$0xff]   ;;  %v3947_v4 = vld [vmem:[#allocation5 + $0x5e4] ss:$16 sps:$4 sm:$0xff]  }
  0xfd   :  { %1592 = vmatprep.subr.bf16.mxu0 %v3857_v5  ;;  %1756 = vmatprep.subr.bf16.mxu1 %v3860_v6  ;;  %v3950_v5 = vld [vmem:[#allocation5 + $0x5ec] ss:$16 sps:$4 sm:$0xff]   ;;  %v3945_v6 = vld [vmem:[#allocation5 + $0x5e0] ss:$16 sps:$4 sm:$0xff]  }
  0xff   :  { %1584 = vmatmul.mubr.bf16.vlgmr.msra.gmra.mrb[0].mxu0 %v3172_v7  ;;  %1748 = vmatmul.mubr.bf16.vlgmr.msra.gmra.mrb[0].mxu1 %v3172_v7  ;;  %v3948_v7 = vld [vmem:[#allocation5 + $0x5e8] ss:$16 sps:$4 sm:$0xff]  }
 0x100   :  { %1593 = vmatpush1.bf16.msra.mxu0 %v3855_v8  ;;  %1757 = vmatpush1.bf16.msra.mxu1 %v3858_v9  ;;  %v3955_v8 = vld [vmem:[#allocation5 + $0x604] ss:$16 sps:$4 sm:$0xff]   ;;  %v3958_v9 = vld [vmem:[#allocation5 + $0x60c] ss:$16 sps:$4 sm:$0xff]  }
 0x101   :  { %1594 = vmatprep.subr.bf16.mxu0 %v3863_v10  ;;  %1758 = vmatprep.subr.bf16.mxu1 %v3866_v12  ;;  %v3953_v10 = vld [vmem:[#allocation5 + $0x600] ss:$16 sps:$4 sm:$0xff]   ;;  %v3956_v12 = vld [vmem:[#allocation5 + $0x608] ss:$16 sps:$4 sm:$0xff]  }
 0x102   :  { %1624 = vmatprep.mubr.bf16.mxu0 %v3175_v13  ;;  %1788 = vmatprep.mubr.bf16.mxu1 %v3175_v13  ;;  %v3174_v13 = vcombine.low %v4555_v11, %v4555_v11  ;;  %v3973_v11 = vld [vmem:[#allocation5 + $0x664] ss:$16 sps:$4 sm:$0xff]  }
 0x104   :  { %1595 = vmatpush1.bf16.msra.mxu0 %v3861_v14  ;;  %1759 = vmatpush1.bf16.msra.mxu1 %v3864_v15  ;;  %v3961_v14 = vld [vmem:[#allocation5 + $0x624] ss:$16 sps:$4 sm:$0xff]   ;;  %v3964_v15 = vld [vmem:[#allocation5 + $0x62c] ss:$16 sps:$4 sm:$0xff]  }
 0x105   :  { %1596 = vmatprep.subr.bf16.mxu0 %v3869_v16  ;;  %1760 = vmatprep.subr.bf16.mxu1 %v3872_v17  ;;  %v3959_v16 = vld [vmem:[#allocation5 + $0x620] ss:$16 sps:$4 sm:$0xff]   ;;  %v3962_v17 = vld [vmem:[#allocation5 + $0x628] ss:$16 sps:$4 sm:$0xff]  }
 0x108   :  { %1597 = vmatpush1.bf16.msra.mxu0 %v3867_v18  ;;  %1761 = vmatpush1.bf16.msra.mxu1 %v3870_v19  ;;  %v3967_v18 = vld [vmem:[#allocation5 + $0x644] ss:$16 sps:$4 sm:$0xff]   ;;  %v3970_v19 = vld [vmem:[#allocation5 + $0x64c] ss:$16 sps:$4 sm:$0xff]  }
 0x109   :  { %1598 = vmatprep.subr.bf16.mxu0 %v3875_v20  ;;  %1762 = vmatprep.subr.bf16.mxu1 %v3878_v21  ;;  %v3965_v20 = vld [vmem:[#allocation5 + $0x640] ss:$16 sps:$4 sm:$0xff]   ;;  %v3968_v21 = vld [vmem:[#allocation5 + $0x648] ss:$16 sps:$4 sm:$0xff]  }
 0x10c   :  { %1599 = vmatpush1.bf16.msra.mxu0 %v3873_v22  ;;  %1763 = vmatpush1.bf16.msra.mxu1 %v3876_v23  ;;  %v4423_v22 = vmov 0   ;;  %v3976_v23 = vld [vmem:[#allocation5 + $0x66c] ss:$16 sps:$4 sm:$0xff]  }
 0x10d   :  { %1600 = vmatprep.subr.bf16.mxu0 %v3881_v24  ;;  %1764 = vmatprep.subr.bf16.mxu1 %v3884_v25  ;;  %v3971_v24 = vld [vmem:[#allocation5 + $0x660] ss:$16 sps:$4 sm:$0xff]   ;;  %v3974_v25 = vld [vmem:[#allocation5 + $0x668] ss:$16 sps:$4 sm:$0xff]  }
 0x110   :  { %1601 = vmatpush1.bf16.msra.mxu0 %v3879_v26  ;;  %1765 = vmatpush1.bf16.msra.mxu1 %v3882_v27  ;;  %v3979_v26 = vld [vmem:[#allocation5 + $0x684] ss:$16 sps:$4 sm:$0xff]   ;;  %v3982_v27 = vld [vmem:[#allocation5 + $0x68c] ss:$16 sps:$4 sm:$0xff]  }
 0x111   :  { %1602 = vmatprep.subr.bf16.mxu0 %v3887_v28  ;;  %1766 = vmatprep.subr.bf16.mxu1 %v3890_v29  ;;  %v3977_v28 = vld [vmem:[#allocation5 + $0x680] ss:$16 sps:$4 sm:$0xff]   ;;  %v3980_v29 = vld [vmem:[#allocation5 + $0x688] ss:$16 sps:$4 sm:$0xff]  }
 0x114   :  { %1603 = vmatpush1.bf16.msra.mxu0 %v3885_v30  ;;  %1767 = vmatpush1.bf16.msra.mxu1 %v3888_v31  ;;  %v3985_v30 = vld [vmem:[#allocation5 + $0x6a4] ss:$16 sps:$4 sm:$0xff]   ;;  %v3988_v31 = vld [vmem:[#allocation5 + $0x6ac] ss:$16 sps:$4 sm:$0xff]  }
 0x115   :  { %1604 = vmatprep.subr.bf16.mxu0 %v3893_v32  ;;  %1768 = vmatprep.subr.bf16.mxu1 %v3896_v33  ;;  %v3983_v32 = vld [vmem:[#allocation5 + $0x6a0] ss:$16 sps:$4 sm:$0xff]   ;;  %v3986_v33 = vld [vmem:[#allocation5 + $0x6a8] ss:$16 sps:$4 sm:$0xff]  }
 0x118   :  { %1605 = vmatpush1.bf16.msra.mxu0 %v3891_v34  ;;  %1769 = vmatpush1.bf16.msra.mxu1 %v3894_v35  ;;  %v3991_v34 = vld [vmem:[#allocation5 + $0x6c4] ss:$16 sps:$4 sm:$0xff]   ;;  %v3994_v35 = vld [vmem:[#allocation5 + $0x6cc] ss:$16 sps:$4 sm:$0xff]  }
 0x119   :  { %1606 = vmatprep.subr.bf16.mxu0 %v3899_v36  ;;  %1770 = vmatprep.subr.bf16.mxu1 %v3902_v37  ;;  %v3989_v36 = vld [vmem:[#allocation5 + $0x6c0] ss:$16 sps:$4 sm:$0xff]   ;;  %v3992_v37 = vld [vmem:[#allocation5 + $0x6c8] ss:$16 sps:$4 sm:$0xff]  }
 0x11c   :  { %1607 = vmatpush1.bf16.msra.mxu0 %v3897_v38  ;;  %1771 = vmatpush1.bf16.msra.mxu1 %v3900_v39  ;;  %v3997_v38 = vld [vmem:[#allocation5 + $0x6e4] ss:$16 sps:$4 sm:$0xff]   ;;  %v4000_v39 = vld [vmem:[#allocation5 + $0x6ec] ss:$16 sps:$4 sm:$0xff]  }
 0x11d   :  { %1608 = vmatprep.subr.bf16.mxu0 %v3905_v40  ;;  %1772 = vmatprep.subr.bf16.mxu1 %v3908_v41  ;;  %v3995_v40 = vld [vmem:[#allocation5 + $0x6e0] ss:$16 sps:$4 sm:$0xff]   ;;  %v3998_v41 = vld [vmem:[#allocation5 + $0x6e8] ss:$16 sps:$4 sm:$0xff]  }
 0x120   :  { %1609 = vmatpush1.bf16.msra.mxu0 %v3903_v42  ;;  %1773 = vmatpush1.bf16.msra.mxu1 %v3906_v43  ;;  %v4004_v42 = vld [vmem:[#allocation8 + $0x4] ss:$16 sps:$4 sm:$0xff]   ;;  %v4007_v43 = vld [vmem:[#allocation8 + $0xc] ss:$16 sps:$4 sm:$0xff]  }
 0x121   :  { %1610 = vmatprep.subr.bf16.mxu0 %v3911_v44  ;;  %1774 = vmatprep.subr.bf16.mxu1 %v3914_v45  ;;  %v4001_v44 = vld [vmem:[#allocation2 + $0x18] ss:$0 sps:$4 sm:$0xff]   ;;  %v4002_v45 = vld [vmem:[#allocation8] ss:$16 sps:$4 sm:$0xff]  }
 0x124   :  { %1611 = vmatpush1.bf16.msra.mxu0 %v3909_v46  ;;  %1775 = vmatpush1.bf16.msra.mxu1 %v3912_v47  ;;  %v4005_v46 = vld [vmem:[#allocation8 + $0x8] ss:$16 sps:$4 sm:$0xff]   ;;  %v4010_v47 = vld [vmem:[#allocation8 + $0x24] ss:$16 sps:$4 sm:$0xff]  }
 0x125   :  { %1612 = vmatprep.subr.bf16.mxu0 %v3917_v48  ;;  %1776 = vmatprep.subr.bf16.mxu1 %v3920_v49  ;;  %v4013_v48 = vld [vmem:[#allocation8 + $0x2c] ss:$16 sps:$4 sm:$0xff]   ;;  %v4008_v49 = vld [vmem:[#allocation8 + $0x20] ss:$16 sps:$4 sm:$0xff]  }
 0x128   :  { %1613 = vmatpush1.bf16.msra.mxu0 %v3915_v50  ;;  %1777 = vmatpush1.bf16.msra.mxu1 %v3918_v51  ;;  %v4011_v50 = vld [vmem:[#allocation8 + $0x28] ss:$16 sps:$4 sm:$0xff]   ;;  %v4016_v51 = vld [vmem:[#allocation8 + $0x44] ss:$16 sps:$4 sm:$0xff]  }
 0x129   :  { %1614 = vmatprep.subr.bf16.mxu0 %v3923_v52  ;;  %1778 = vmatprep.subr.bf16.mxu1 %v3926_v53  ;;  %v4019_v52 = vld [vmem:[#allocation8 + $0x4c] ss:$16 sps:$4 sm:$0xff]   ;;  %v4014_v53 = vld [vmem:[#allocation8 + $0x40] ss:$16 sps:$4 sm:$0xff]  }
 0x12c   :  { %1615 = vmatpush1.bf16.msra.mxu0 %v3921_v54  ;;  %1779 = vmatpush1.bf16.msra.mxu1 %v3924_v55  ;;  %v4017_v54 = vld [vmem:[#allocation8 + $0x48] ss:$16 sps:$4 sm:$0xff]   ;;  %v4022_v55 = vld [vmem:[#allocation8 + $0x64] ss:$16 sps:$4 sm:$0xff]  }
 0x12d   :  { %1616 = vmatprep.subr.bf16.mxu0 %v3929_v56  ;;  %1780 = vmatprep.subr.bf16.mxu1 %v3932_v57  ;;  %v4025_v56 = vld [vmem:[#allocation8 + $0x6c] ss:$16 sps:$4 sm:$0xff]   ;;  %v4020_v57 = vld [vmem:[#allocation8 + $0x60] ss:$16 sps:$4 sm:$0xff]  }
 0x130   :  { %1617 = vmatpush1.bf16.msra.mxu0 %v3927_v58  ;;  %1781 = vmatpush1.bf16.msra.mxu1 %v3930_v59  ;;  %v4023_v58 = vld [vmem:[#allocation8 + $0x68] ss:$16 sps:$4 sm:$0xff]   ;;  %v4028_v59 = vld [vmem:[#allocation8 + $0x84] ss:$16 sps:$4 sm:$0xff]  }
 0x131   :  { %1618 = vmatprep.subr.bf16.mxu0 %v3935_v60  ;;  %1782 = vmatprep.subr.bf16.mxu1 %v3938_v61  ;;  %v4031_v60 = vld [vmem:[#allocation8 + $0x8c] ss:$16 sps:$4 sm:$0xff]   ;;  %v4026_v61 = vld [vmem:[#allocation8 + $0x80] ss:$16 sps:$4 sm:$0xff]  }
 0x134   :  { %1619 = vmatpush1.bf16.msra.mxu0 %v3933_v62  ;;  %1783 = vmatpush1.bf16.msra.mxu1 %v3936_v63  ;;  %v4029_v62 = vld [vmem:[#allocation8 + $0x88] ss:$16 sps:$4 sm:$0xff]   ;;  %v4034_v63 = vld [vmem:[#allocation8 + $0xa4] ss:$16 sps:$4 sm:$0xff]  }
 0x135   :  { %1620 = vmatprep.subr.bf16.mxu0 %v3941_v0  ;;  %1784 = vmatprep.subr.bf16.mxu1 %v3944_v1  ;;  %v4037_v0 = vld [vmem:[#allocation8 + $0xac] ss:$16 sps:$4 sm:$0xff]   ;;  %v4032_v1 = vld [vmem:[#allocation8 + $0xa0] ss:$16 sps:$4 sm:$0xff]  }
 0x138   :  { %1621 = vmatpush1.bf16.msra.mxu0 %v3939_v2  ;;  %1785 = vmatpush1.bf16.msra.mxu1 %v3942_v3  ;;  %v4035_v2 = vld [vmem:[#allocation8 + $0xa8] ss:$16 sps:$4 sm:$0xff]   ;;  %v4040_v3 = vld [vmem:[#allocation8 + $0xc4] ss:$16 sps:$4 sm:$0xff]  }
 0x139   :  { %1622 = vmatprep.subr.bf16.mxu0 %v3947_v4  ;;  %1786 = vmatprep.subr.bf16.mxu1 %v3950_v5  ;;  %v4043_v4 = vld [vmem:[#allocation8 + $0xcc] ss:$16 sps:$4 sm:$0xff]   ;;  %v4038_v5 = vld [vmem:[#allocation8 + $0xc0] ss:$16 sps:$4 sm:$0xff]  }
 0x13c   :  { %1623 = vmatpush1.bf16.msra.mxu0 %v3945_v6  ;;  %1787 = vmatpush1.bf16.msra.mxu1 %v3948_v7  ;;  %v4041_v6 = vld [vmem:[#allocation8 + $0xc8] ss:$16 sps:$4 sm:$0xff]   ;;  %v4046_v7 = vld [vmem:[#allocation8 + $0xe4] ss:$16 sps:$4 sm:$0xff]  }
 0x13d   :  { %1633 = vmatprep.subr.bf16.mxu0 %v3955_v8  ;;  %1797 = vmatprep.subr.bf16.mxu1 %v3958_v9  ;;  %v4049_v8 = vld [vmem:[#allocation8 + $0xec] ss:$16 sps:$4 sm:$0xff]   ;;  %v4044_v9 = vld [vmem:[#allocation8 + $0xe0] ss:$16 sps:$4 sm:$0xff]  }
 0x13f   :  { %1625 = vmatmul.mubr.bf16.vlgmr.msra.gmra.mrb[0].mxu0 %v3174_v13  ;;  %1789 = vmatmul.mubr.bf16.vlgmr.msra.gmra.mrb[0].mxu1 %v3174_v13  ;;  %v4055_v13 = vld [vmem:[#allocation8 + $0x10c] ss:$16 sps:$4 sm:$0xff]  }
 0x140   :  { %1634 = vmatpush1.bf16.msra.mxu0 %v3953_v10  ;;  %1798 = vmatpush1.bf16.msra.mxu1 %v3956_v12  ;;  %v4047_v10 = vld [vmem:[#allocation8 + $0xe8] ss:$16 sps:$4 sm:$0xff]   ;;  %v4052_v12 = vld [vmem:[#allocation8 + $0x104] ss:$16 sps:$4 sm:$0xff]  }
 0x141   :  { %1635 = vmatprep.subr.bf16.mxu0 %v3961_v14  ;;  %1799 = vmatprep.subr.bf16.mxu1 %v3964_v15  ;;  %v4050_v14 = vld [vmem:[#allocation8 + $0x100] ss:$16 sps:$4 sm:$0xff]   ;;  %v4053_v15 = vld [vmem:[#allocation8 + $0x108] ss:$16 sps:$4 sm:$0xff]  }
 0x142   :  { %1665 = vmatprep.mubr.bf16.mxu0 %v4423_v22  ;;  %1829 = vmatprep.mubr.bf16.mxu1 %v4423_v22  ;;  %v4062_v22 = vld [vmem:[#allocation8 + $0x140] ss:$16 sps:$4 sm:$0xff]  }
 0x144   :  { %1636 = vmatpush1.bf16.msra.mxu0 %v3959_v16  ;;  %1800 = vmatpush1.bf16.msra.mxu1 %v3962_v17  ;;  %v4058_v16 = vld [vmem:[#allocation8 + $0x124] ss:$16 sps:$4 sm:$0xff]   ;;  %v4061_v17 = vld [vmem:[#allocation8 + $0x12c] ss:$16 sps:$4 sm:$0xff]  }
 0x145   :  { %1637 = vmatprep.subr.bf16.mxu0 %v3967_v18  ;;  %1801 = vmatprep.subr.bf16.mxu1 %v3970_v19  ;;  %v4056_v18 = vld [vmem:[#allocation8 + $0x120] ss:$16 sps:$4 sm:$0xff]   ;;  %v4059_v19 = vld [vmem:[#allocation8 + $0x128] ss:$16 sps:$4 sm:$0xff]  }
 0x148   :  { %1638 = vmatpush1.bf16.msra.mxu0 %v3965_v20  ;;  %1802 = vmatpush1.bf16.msra.mxu1 %v3968_v21  ;;  %v4064_v20 = vld [vmem:[#allocation8 + $0x144] ss:$16 sps:$4 sm:$0xff]   ;;  %v4067_v21 = vld [vmem:[#allocation8 + $0x14c] ss:$16 sps:$4 sm:$0xff]  }
 0x149   :  { %1639 = vmatprep.subr.bf16.mxu0 %v3973_v11  ;;  %1803 = vmatprep.subr.bf16.mxu1 %v3976_v23  ;;  %v4065_v11 = vld [vmem:[#allocation8 + $0x148] ss:$16 sps:$4 sm:$0xff]   ;;  %v4070_v23 = vld [vmem:[#allocation8 + $0x164] ss:$16 sps:$4 sm:$0xff]  }
 0x14c   :  { %1640 = vmatpush1.bf16.msra.mxu0 %v3971_v24  ;;  %1804 = vmatpush1.bf16.msra.mxu1 %v3974_v25  ;;  %v4073_v24 = vld [vmem:[#allocation8 + $0x16c] ss:$16 sps:$4 sm:$0xff]   ;;  %v4068_v25 = vld [vmem:[#allocation8 + $0x160] ss:$16 sps:$4 sm:$0xff]  }
 0x14d   :  { %1641 = vmatprep.subr.bf16.mxu0 %v3979_v26  ;;  %1805 = vmatprep.subr.bf16.mxu1 %v3982_v27  ;;  %v4071_v26 = vld [vmem:[#allocation8 + $0x168] ss:$16 sps:$4 sm:$0xff]   ;;  %v4076_v27 = vld [vmem:[#allocation8 + $0x184] ss:$16 sps:$4 sm:$0xff]  }
 0x150   :  { %1642 = vmatpush1.bf16.msra.mxu0 %v3977_v28  ;;  %1806 = vmatpush1.bf16.msra.mxu1 %v3980_v29  ;;  %v4079_v28 = vld [vmem:[#allocation8 + $0x18c] ss:$16 sps:$4 sm:$0xff]   ;;  %v4074_v29 = vld [vmem:[#allocation8 + $0x180] ss:$16 sps:$4 sm:$0xff]  }
 0x151   :  { %1643 = vmatprep.subr.bf16.mxu0 %v3985_v30  ;;  %1807 = vmatprep.subr.bf16.mxu1 %v3988_v31  ;;  %v4077_v30 = vld [vmem:[#allocation8 + $0x188] ss:$16 sps:$4 sm:$0xff]   ;;  %v4082_v31 = vld [vmem:[#allocation8 + $0x1a4] ss:$16 sps:$4 sm:$0xff]  }
 0x154   :  { %1644 = vmatpush1.bf16.msra.mxu0 %v3983_v32  ;;  %1808 = vmatpush1.bf16.msra.mxu1 %v3986_v33  ;;  %v4085_v32 = vld [vmem:[#allocation8 + $0x1ac] ss:$16 sps:$4 sm:$0xff]   ;;  %v4080_v33 = vld [vmem:[#allocation8 + $0x1a0] ss:$16 sps:$4 sm:$0xff]  }
 0x155   :  { %1645 = vmatprep.subr.bf16.mxu0 %v3991_v34  ;;  %1809 = vmatprep.subr.bf16.mxu1 %v3994_v35  ;;  %v4083_v34 = vld [vmem:[#allocation8 + $0x1a8] ss:$16 sps:$4 sm:$0xff]   ;;  %v4088_v35 = vld [vmem:[#allocation8 + $0x1c4] ss:$16 sps:$4 sm:$0xff]  }
 0x158   :  { %1646 = vmatpush1.bf16.msra.mxu0 %v3989_v36  ;;  %1810 = vmatpush1.bf16.msra.mxu1 %v3992_v37  ;;  %v4091_v36 = vld [vmem:[#allocation8 + $0x1cc] ss:$16 sps:$4 sm:$0xff]   ;;  %v4086_v37 = vld [vmem:[#allocation8 + $0x1c0] ss:$16 sps:$4 sm:$0xff]  }
 0x159   :  { %1647 = vmatprep.subr.bf16.mxu0 %v3997_v38  ;;  %1811 = vmatprep.subr.bf16.mxu1 %v4000_v39  ;;  %v4089_v38 = vld [vmem:[#allocation8 + $0x1c8] ss:$16 sps:$4 sm:$0xff]   ;;  %v4094_v39 = vld [vmem:[#allocation8 + $0x1e4] ss:$16 sps:$4 sm:$0xff]  }
 0x15c   :  { %1648 = vmatpush1.bf16.msra.mxu0 %v3995_v40  ;;  %1812 = vmatpush1.bf16.msra.mxu1 %v3998_v41  ;;  %v4097_v40 = vld [vmem:[#allocation8 + $0x1ec] ss:$16 sps:$4 sm:$0xff]   ;;  %v4092_v41 = vld [vmem:[#allocation8 + $0x1e0] ss:$16 sps:$4 sm:$0xff]  }
 0x15d   :  { %2636 = vmatprep.subr.bf16.mxu0 %v4004_v42  ;;  %2718 = vmatprep.subr.bf16.mxu1 %v4007_v43  ;;  %v4095_v42 = vld [vmem:[#allocation8 + $0x1e8] ss:$16 sps:$4 sm:$0xff]   ;;  %v4100_v43 = vld [vmem:[#allocation8 + $0x204] ss:$16 sps:$4 sm:$0xff]  }
 0x15f   :  { %1666 = vmatmul.mubr.bf16.vlgmr.msra.gmra.mrb[0].mxu0 %v4001_v44  ;;  %1830 = vmatmul.mubr.bf16.vlgmr.msra.gmra.mrb[0].mxu1 %v4001_v44  ;;  %v4103_v44 = vld [vmem:[#allocation8 + $0x20c] ss:$16 sps:$4 sm:$0xff]  }
 0x160   :  { %2637 = vmatpush1.bf16.msra.mxu0 %v4002_v45  ;;  %2719 = vmatpush1.bf16.msra.mxu1 %v4005_v46  ;;  %v345_v45 = vlaneseq }
 0x161   :  { %2638 = vmatprep.subr.bf16.mxu0 %v4010_v47  ;;  %2720 = vmatprep.subr.bf16.mxu1 %v4013_v48  ;;  %v4564_v48 = vld [vmem:[#allocation7] sm:$0xf] }
 0x162   :  { %v4561_v46 = vshrl.u32 %v345_v45, 7  ;;  %v4160_v45 = vld [vmem:[#allocation8 + $0x344] ss:$16 sps:$4 sm:$0xff]  }
 0x164   :  { %2639 = vmatpush1.bf16.msra.mxu0 %v4008_v49  ;;  %2721 = vmatpush1.bf16.msra.mxu1 %v4011_v50  ;;  %v347_v47 = vsub.s32 0, %v4561_v46  ;;  %v351_v49 = vsub.s32 1, %v4561_v46  ;;  %v359_v50 = vsub.s32 3, %v4561_v46 }
 0x165   :  { %2640 = vmatprep.subr.bf16.mxu0 %v4016_v51  ;;  %2722 = vmatprep.subr.bf16.mxu1 %v4019_v52 }
 0x166   :  { %v348_v51 = vrot.slane %v4564_v48, %v347_v47  ;;  %v352_v52 = vrot.slane %v4564_v48, %v351_v49 }
 0x168   :  { %2641 = vmatpush1.bf16.msra.mxu0 %v4014_v53  ;;  %2723 = vmatpush1.bf16.msra.mxu1 %v4017_v54  ;;  %v360_v53 = vrot.slane %v4564_v48, %v359_v50 }
 0x169   :  { %2642 = vmatprep.subr.bf16.mxu0 %v4022_v55  ;;  %2724 = vmatprep.subr.bf16.mxu1 %v4025_v56 }
 0x16c   :  { %2643 = vmatpush1.bf16.msra.mxu0 %v4020_v57  ;;  %2725 = vmatpush1.bf16.msra.mxu1 %v4023_v58 }
 0x16d   :  { %2644 = vmatprep.subr.bf16.mxu0 %v4028_v59  ;;  %2726 = vmatprep.subr.bf16.mxu1 %v4031_v60 }
 0x170   :  { %2645 = vmatpush1.bf16.msra.mxu0 %v4026_v61  ;;  %2727 = vmatpush1.bf16.msra.mxu1 %v4029_v62 }
 0x171   :  { %2646 = vmatprep.subr.bf16.mxu0 %v4034_v63  ;;  %2728 = vmatprep.subr.bf16.mxu1 %v4037_v0 }
 0x174   :  { %2647 = vmatpush1.bf16.msra.mxu0 %v4032_v1  ;;  %2729 = vmatpush1.bf16.msra.mxu1 %v4035_v2 }
 0x175   :  { %2648 = vmatprep.subr.bf16.mxu0 %v4040_v3  ;;  %2730 = vmatprep.subr.bf16.mxu1 %v4043_v4 }
 0x178   :  { %2649 = vmatpush1.bf16.msra.mxu0 %v4038_v5  ;;  %2731 = vmatpush1.bf16.msra.mxu1 %v4041_v6  ;;  %v4098_v5 = vld [vmem:[#allocation8 + $0x200] ss:$16 sps:$4 sm:$0xff]   ;;  %v4101_v6 = vld [vmem:[#allocation8 + $0x208] ss:$16 sps:$4 sm:$0xff]  }
 0x179   :  { %2650 = vmatprep.subr.bf16.mxu0 %v4046_v7  ;;  %2732 = vmatprep.subr.bf16.mxu1 %v4049_v8  ;;  %v4106_v8 = vld [vmem:[#allocation8 + $0x224] ss:$16 sps:$4 sm:$0xff]  }
 0x17c   :  { %2651 = vmatpush1.bf16.msra.mxu0 %v4044_v9  ;;  %2733 = vmatpush1.bf16.msra.mxu1 %v4047_v10  ;;  %v4109_v9 = vld [vmem:[#allocation8 + $0x22c] ss:$16 sps:$4 sm:$0xff]  }
 0x17d   :  { %2652 = vmatprep.subr.bf16.mxu0 %v4052_v12  ;;  %2734 = vmatprep.subr.bf16.mxu1 %v4055_v13  ;;  %v4104_v12 = vld [vmem:[#allocation8 + $0x220] ss:$16 sps:$4 sm:$0xff]   ;;  %v4107_v13 = vld [vmem:[#allocation8 + $0x228] ss:$16 sps:$4 sm:$0xff]  }
 0x180   :  { %2653 = vmatpush1.bf16.msra.mxu0 %v4050_v14  ;;  %2735 = vmatpush1.bf16.msra.mxu1 %v4053_v15  ;;  %v4112_v14 = vld [vmem:[#allocation8 + $0x244] ss:$16 sps:$4 sm:$0xff]   ;;  %v4115_v15 = vld [vmem:[#allocation8 + $0x24c] ss:$16 sps:$4 sm:$0xff]  }
 0x181   :  { %2654 = vmatprep.subr.bf16.mxu0 %v4058_v16  ;;  %2736 = vmatprep.subr.bf16.mxu1 %v4061_v17  ;;  %v4110_v16 = vld [vmem:[#allocation8 + $0x240] ss:$16 sps:$4 sm:$0xff]   ;;  %v4113_v17 = vld [vmem:[#allocation8 + $0x248] ss:$16 sps:$4 sm:$0xff]  }
 0x184   :  { %2655 = vmatpush1.bf16.msra.mxu0 %v4056_v18  ;;  %2737 = vmatpush1.bf16.msra.mxu1 %v4059_v19  ;;  %v4118_v18 = vld [vmem:[#allocation8 + $0x264] ss:$16 sps:$4 sm:$0xff]   ;;  %v4121_v19 = vld [vmem:[#allocation8 + $0x26c] ss:$16 sps:$4 sm:$0xff]  }
 0x185   :  { %2656 = vmatprep.subr.bf16.mxu0 %v4064_v20  ;;  %2738 = vmatprep.subr.bf16.mxu1 %v4067_v21  ;;  %v4116_v20 = vld [vmem:[#allocation8 + $0x260] ss:$16 sps:$4 sm:$0xff]   ;;  %v4119_v21 = vld [vmem:[#allocation8 + $0x268] ss:$16 sps:$4 sm:$0xff]  }
 0x188   :  { %2657 = vmatpush1.bf16.msra.mxu0 %v4062_v22  ;;  %2739 = vmatpush1.bf16.msra.mxu1 %v4065_v11  ;;  %v4124_v22 = vld [vmem:[#allocation8 + $0x284] ss:$16 sps:$4 sm:$0xff]   ;;  %v4127_v11 = vld [vmem:[#allocation8 + $0x28c] ss:$16 sps:$4 sm:$0xff]  }
 0x189   :  { %2658 = vmatprep.subr.bf16.mxu0 %v4070_v23  ;;  %2740 = vmatprep.subr.bf16.mxu1 %v4073_v24  ;;  %v4122_v23 = vld [vmem:[#allocation8 + $0x280] ss:$16 sps:$4 sm:$0xff]   ;;  %v4125_v24 = vld [vmem:[#allocation8 + $0x288] ss:$16 sps:$4 sm:$0xff]  }
 0x18c   :  { %2659 = vmatpush1.bf16.msra.mxu0 %v4068_v25  ;;  %2741 = vmatpush1.bf16.msra.mxu1 %v4071_v26  ;;  %v4130_v25 = vld [vmem:[#allocation8 + $0x2a4] ss:$16 sps:$4 sm:$0xff]   ;;  %v4133_v26 = vld [vmem:[#allocation8 + $0x2ac] ss:$16 sps:$4 sm:$0xff]  }
 0x18d   :  { %2660 = vmatprep.subr.bf16.mxu0 %v4076_v27  ;;  %2742 = vmatprep.subr.bf16.mxu1 %v4079_v28  ;;  %v4128_v27 = vld [vmem:[#allocation8 + $0x2a0] ss:$16 sps:$4 sm:$0xff]   ;;  %v4131_v28 = vld [vmem:[#allocation8 + $0x2a8] ss:$16 sps:$4 sm:$0xff]  }
 0x190   :  { %2661 = vmatpush1.bf16.msra.mxu0 %v4074_v29  ;;  %2743 = vmatpush1.bf16.msra.mxu1 %v4077_v30  ;;  %v4136_v29 = vld [vmem:[#allocation8 + $0x2c4] ss:$16 sps:$4 sm:$0xff]   ;;  %v4139_v30 = vld [vmem:[#allocation8 + $0x2cc] ss:$16 sps:$4 sm:$0xff]  }
 0x191   :  { %2662 = vmatprep.subr.bf16.mxu0 %v4082_v31  ;;  %2744 = vmatprep.subr.bf16.mxu1 %v4085_v32  ;;  %v4134_v31 = vld [vmem:[#allocation8 + $0x2c0] ss:$16 sps:$4 sm:$0xff]   ;;  %v4137_v32 = vld [vmem:[#allocation8 + $0x2c8] ss:$16 sps:$4 sm:$0xff]  }
 0x194   :  { %2663 = vmatpush1.bf16.msra.mxu0 %v4080_v33  ;;  %2745 = vmatpush1.bf16.msra.mxu1 %v4083_v34  ;;  %v4142_v33 = vld [vmem:[#allocation8 + $0x2e4] ss:$16 sps:$4 sm:$0xff]   ;;  %v4145_v34 = vld [vmem:[#allocation8 + $0x2ec] ss:$16 sps:$4 sm:$0xff]  }
 0x195   :  { %2664 = vmatprep.subr.bf16.mxu0 %v4088_v35  ;;  %2746 = vmatprep.subr.bf16.mxu1 %v4091_v36  ;;  %v4140_v35 = vld [vmem:[#allocation8 + $0x2e0] ss:$16 sps:$4 sm:$0xff]   ;;  %v4143_v36 = vld [vmem:[#allocation8 + $0x2e8] ss:$16 sps:$4 sm:$0xff]  }
 0x198   :  { %2665 = vmatpush1.bf16.msra.mxu0 %v4086_v37  ;;  %2747 = vmatpush1.bf16.msra.mxu1 %v4089_v38  ;;  %v4148_v37 = vld [vmem:[#allocation8 + $0x304] ss:$16 sps:$4 sm:$0xff]   ;;  %v4151_v38 = vld [vmem:[#allocation8 + $0x30c] ss:$16 sps:$4 sm:$0xff]  }
 0x199   :  { %2666 = vmatprep.subr.bf16.mxu0 %v4094_v39  ;;  %2748 = vmatprep.subr.bf16.mxu1 %v4097_v40  ;;  %v4146_v39 = vld [vmem:[#allocation8 + $0x300] ss:$16 sps:$4 sm:$0xff]   ;;  %v4149_v40 = vld [vmem:[#allocation8 + $0x308] ss:$16 sps:$4 sm:$0xff]  }
 0x19c   :  { %2667 = vmatpush1.bf16.msra.mxu0 %v4092_v41  ;;  %2749 = vmatpush1.bf16.msra.mxu1 %v4095_v42  ;;  %v4154_v41 = vld [vmem:[#allocation8 + $0x324] ss:$16 sps:$4 sm:$0xff]   ;;  %v4157_v42 = vld [vmem:[#allocation8 + $0x32c] ss:$16 sps:$4 sm:$0xff]  }
 0x19d   :  { %2677 = vmatprep.subr.bf16.mxu0 %v4100_v43  ;;  %2759 = vmatprep.subr.bf16.mxu1 %v4103_v44  ;;  %v4152_v43 = vld [vmem:[#allocation8 + $0x320] ss:$16 sps:$4 sm:$0xff]   ;;  %v4155_v44 = vld [vmem:[#allocation8 + $0x328] ss:$16 sps:$4 sm:$0xff]  }
 0x232   :  { %v1667_v54 = vpop.f32.mrb[0].mxu0  ;;  %v4577_v55 = vpop.f32.mrb[0].mxu1 }
 0x233   :  { %v3606_v56 = vadd.f32 %v1667_v54, %v348_v51  ;;  %v1669_v57 = vpop.f32.mrb[1].mxu0  ;;  %v1833_v58 = vpop.f32.mrb[1].mxu1  ;;  %v4163_v51 = vld [vmem:[#allocation8 + $0x34c] ss:$16 sps:$4 sm:$0xff]   ;;  %v4166_v54 = vld [vmem:[#allocation8 + $0x364] ss:$16 sps:$4 sm:$0xff]  }
 0x234   :  { %v3607_v59 = vadd.f32 %v1669_v57, %v352_v52  ;;  %v3609_v60 = vadd.f32 %v1833_v58, %v360_v53  ;;  %v1671_v61 = vpop.f32.mrb[2].mxu0  ;;  %v1835_v62 = vpop.f32.mrb[2].mxu1  ;;  %v4158_v52 = vld [vmem:[#allocation8 + $0x340] ss:$16 sps:$4 sm:$0xff]   ;;  %v4161_v53 = vld [vmem:[#allocation8 + $0x348] ss:$16 sps:$4 sm:$0xff]  }
 0x235   :  { %v1838_v63 = vmax.f32 %v3606_v56, 0.0  ;;  %v1672_v0 = vpop.f32.mrb[3].mxu0  ;;  %v1836_v1 = vpop.f32.mrb[3].mxu1  ;;  %v4169_v56 = vld [vmem:[#allocation8 + $0x36c] ss:$16 sps:$4 sm:$0xff]  }
 0x236   :  { %v1839_v2 = vmax.f32 %v3607_v59, 0.0  ;;  %v1841_v3 = vmax.f32 %v3609_v60, 0.0  ;;  %v4164_v57 = vld [vmem:[#allocation8 + $0x360] ss:$16 sps:$4 sm:$0xff]   ;;  %v4167_v58 = vld [vmem:[#allocation8 + $0x368] ss:$16 sps:$4 sm:$0xff]  }
 0x237   :  { %v1842_v7 = vpack.c.bf16 %v1838_v63, %v1838_v63  ;;  %v4172_v59 = vld [vmem:[#allocation8 + $0x384] ss:$16 sps:$4 sm:$0xff]   ;;  %v4175_v60 = vld [vmem:[#allocation8 + $0x38c] ss:$16 sps:$4 sm:$0xff]   ;;  %v4170_v61 = vld [vmem:[#allocation8 + $0x380] ss:$16 sps:$4 sm:$0xff]  }
 0x238   :  { %v1843_v4 = vpack.c.bf16 %v1839_v2, %v1839_v2  ;;  %v1845_v10 = vpack.c.bf16 %v1841_v3, %v1841_v3  ;;  %v4173_v62 = vld [vmem:[#allocation8 + $0x388] ss:$16 sps:$4 sm:$0xff]   ;;  %v355_v63 = vsub.s32 2, %v4561_v46  ;;  %v4178_v0 = vld [vmem:[#allocation8 + $0x3a4] ss:$16 sps:$4 sm:$0xff]  }
 0x239   :  { %v4181_v1 = vld [vmem:[#allocation8 + $0x3ac] ss:$16 sps:$4 sm:$0xff]   ;;  %v4176_v2 = vld [vmem:[#allocation8 + $0x3a0] ss:$16 sps:$4 sm:$0xff]   ;;  %v4179_v3 = vld [vmem:[#allocation8 + $0x3a8] ss:$16 sps:$4 sm:$0xff]  }
 0x23a   :  { %2668 = vmatprep.mubr.bf16.mxu0 %v1843_v4  ;;  %2750 = vmatprep.mubr.bf16.mxu1 %v1843_v4  ;;  %v356_v4 = vrot.slane %v4564_v48, %v355_v63  ;;  %v4194_v48 = vld [vmem:[#allocation11 + $0x40] sm:$0xff]  }
 0x23b   :  { %2669 = vmatmul.mubr.bf16.vlgmr.msra.gmra.mrb[4].mxu0 %v1842_v7  ;;  %2751 = vmatmul.mubr.bf16.vlgmr.msra.gmra.mrb[4].mxu1 %v1842_v7  ;;  %v4182_v7 = vld [vmem:[#allocation8 + $0x3c0] ss:$16 sps:$4 sm:$0xff]  }
 0x23c   :  { %2678 = vmatpush1.bf16.msra.mxu0 %v4098_v5  ;;  %2760 = vmatpush1.bf16.msra.mxu1 %v4101_v6  ;;  %v4184_v5 = vld [vmem:[#allocation8 + $0x3c4] ss:$16 sps:$4 sm:$0xff]   ;;  %v4187_v6 = vld [vmem:[#allocation8 + $0x3cc] ss:$16 sps:$4 sm:$0xff]  }
 0x23d   :  { %2709 = vmatprep.mubr.bf16.mxu0 %v1845_v10  ;;  %2791 = vmatprep.mubr.bf16.mxu1 %v1845_v10  ;;  %v4190_v10 = vld [vmem:[#allocation8 + $0x3e4] ss:$16 sps:$4 sm:$0xff]  }
 0x23e   :  { %2679 = vmatprep.subr.bf16.mxu0 %v4106_v8  ;;  %2761 = vmatprep.subr.bf16.mxu1 %v4109_v9  ;;  %v4185_v8 = vld [vmem:[#allocation8 + $0x3c8] ss:$16 sps:$4 sm:$0xff]   ;;  %v3608_v9 = vadd.f32 %v4577_v55, %v356_v4  ;;  %v4198_v55 = vld [vmem:[#allocation11 + $0x48] sm:$0xff]  }
 0x240   :  { %2680 = vmatpush1.bf16.msra.mxu0 %v4104_v12  ;;  %2762 = vmatpush1.bf16.msra.mxu1 %v4107_v13  ;;  %v4193_v12 = vld [vmem:[#allocation8 + $0x3ec] ss:$16 sps:$4 sm:$0xff]   ;;  %v4188_v13 = vld [vmem:[#allocation8 + $0x3e0] ss:$16 sps:$4 sm:$0xff]  }
 0x241   :  { %2681 = vmatprep.subr.bf16.mxu0 %v4112_v14  ;;  %2763 = vmatprep.subr.bf16.mxu1 %v4115_v15  ;;  %v4191_v14 = vld [vmem:[#allocation8 + $0x3e8] ss:$16 sps:$4 sm:$0xff]   ;;  %v1840_v15 = vmax.f32 %v3608_v9, 0.0 }
 0x244   :  { %2682 = vmatpush1.bf16.msra.mxu0 %v4110_v16  ;;  %2764 = vmatpush1.bf16.msra.mxu1 %v4113_v17  ;;  %v4195_v16 = vld [vmem:[#allocation11 + $0xc0] sm:$0xff]  }
 0x245   :  { %2683 = vmatprep.subr.bf16.mxu0 %v4118_v18  ;;  %2765 = vmatprep.subr.bf16.mxu1 %v4121_v19  ;;  %v4196_v17 = vld [vmem:[#allocation11] sm:$0xff]   ;;  %v1844_v19 = vpack.c.bf16 %v1840_v15, %v1840_v15 }
 0x246   :  { %v4197_v18 = vld [vmem:[#allocation11 + $0x80] sm:$0xff]  }
 0x248   :  { %2684 = vmatpush1.bf16.msra.mxu0 %v4116_v20  ;;  %2766 = vmatpush1.bf16.msra.mxu1 %v4119_v21  ;;  %v4199_v20 = vld [vmem:[#allocation11 + $0xc8] sm:$0xff]  }
 0x249   :  { %2685 = vmatprep.subr.bf16.mxu0 %v4124_v22  ;;  %2767 = vmatprep.subr.bf16.mxu1 %v4127_v11  ;;  %v4200_v21 = vld [vmem:[#allocation11 + $0x8] sm:$0xff]   ;;  %v4202_v11 = vld [vmem:[#allocation11 + $0x50] sm:$0xff]  }
 0x24a   :  { %v4201_v22 = vld [vmem:[#allocation11 + $0x88] sm:$0xff]  }
 0x24c   :  { %2686 = vmatpush1.bf16.msra.mxu0 %v4122_v23  ;;  %2768 = vmatpush1.bf16.msra.mxu1 %v4125_v24  ;;  %v4203_v23 = vld [vmem:[#allocation11 + $0xd0] sm:$0xff]  }
 0x24d   :  { %2687 = vmatprep.subr.bf16.mxu0 %v4130_v25  ;;  %2769 = vmatprep.subr.bf16.mxu1 %v4133_v26  ;;  %v4204_v24 = vld [vmem:[#allocation11 + $0x10] sm:$0xff]   ;;  %v4206_v26 = vld [vmem:[#allocation11 + $0x58] sm:$0xff]  }
 0x24e   :  { %v4205_v25 = vld [vmem:[#allocation11 + $0x90] sm:$0xff]  }
 0x250   :  { %2688 = vmatpush1.bf16.msra.mxu0 %v4128_v27  ;;  %2770 = vmatpush1.bf16.msra.mxu1 %v4131_v28  ;;  %v4207_v27 = vld [vmem:[#allocation11 + $0xd8] sm:$0xff]  }
 0x251   :  { %2689 = vmatprep.subr.bf16.mxu0 %v4136_v29  ;;  %2771 = vmatprep.subr.bf16.mxu1 %v4139_v30  ;;  %v4208_v28 = vld [vmem:[#allocation11 + $0x18] sm:$0xff]   ;;  %v4210_v30 = vld [vmem:[#allocation11 + $0x60] sm:$0xff]  }
 0x252   :  { %v4209_v29 = vld [vmem:[#allocation11 + $0x98] sm:$0xff]  }
 0x254   :  { %2690 = vmatpush1.bf16.msra.mxu0 %v4134_v31  ;;  %2772 = vmatpush1.bf16.msra.mxu1 %v4137_v32  ;;  %v4211_v31 = vld [vmem:[#allocation11 + $0xe0] sm:$0xff]  }
 0x255   :  { %2691 = vmatprep.subr.bf16.mxu0 %v4142_v33  ;;  %2773 = vmatprep.subr.bf16.mxu1 %v4145_v34  ;;  %v4212_v32 = vld [vmem:[#allocation11 + $0x20] sm:$0xff]   ;;  %v4214_v34 = vld [vmem:[#allocation11 + $0x68] sm:$0xff]  }
 0x256   :  { %v4213_v33 = vld [vmem:[#allocation11 + $0xa0] sm:$0xff]  }
 0x258   :  { %2692 = vmatpush1.bf16.msra.mxu0 %v4140_v35  ;;  %2774 = vmatpush1.bf16.msra.mxu1 %v4143_v36  ;;  %v4215_v35 = vld [vmem:[#allocation11 + $0xe8] sm:$0xff]  }
 0x259   :  { %2693 = vmatprep.subr.bf16.mxu0 %v4148_v37  ;;  %2775 = vmatprep.subr.bf16.mxu1 %v4151_v38  ;;  %v4216_v36 = vld [vmem:[#allocation11 + $0x28] sm:$0xff]   ;;  %v4218_v38 = vld [vmem:[#allocation11 + $0x70] sm:$0xff]  }
 0x25a   :  { %v4217_v37 = vld [vmem:[#allocation11 + $0xa8] sm:$0xff]  }
 0x25c   :  { %2694 = vmatpush1.bf16.msra.mxu0 %v4146_v39  ;;  %2776 = vmatpush1.bf16.msra.mxu1 %v4149_v40  ;;  %v4219_v39 = vld [vmem:[#allocation11 + $0xf0] sm:$0xff]  }
 0x25d   :  { %2695 = vmatprep.subr.bf16.mxu0 %v4154_v41  ;;  %2777 = vmatprep.subr.bf16.mxu1 %v4157_v42  ;;  %v4220_v40 = vld [vmem:[#allocation11 + $0x30] sm:$0xff]   ;;  %v4222_v42 = vld [vmem:[#allocation11 + $0x78] sm:$0xff]  }
 0x25e   :  { %v4221_v41 = vld [vmem:[#allocation11 + $0xb0] sm:$0xff]  }
 0x260   :  { %2696 = vmatpush1.bf16.msra.mxu0 %v4152_v43  ;;  %2778 = vmatpush1.bf16.msra.mxu1 %v4155_v44  ;;  %v4223_v43 = vld [vmem:[#allocation11 + $0xf8] sm:$0xff]  }
 0x261   :  { %2697 = vmatprep.subr.bf16.mxu0 %v4160_v45  ;;  %2779 = vmatprep.subr.bf16.mxu1 %v4163_v51  ;;  %v4224_v44 = vld [vmem:[#allocation11 + $0x38] sm:$0xff]  }
 0x262   :  { %v4225_v45 = vld [vmem:[#allocation11 + $0xb8] sm:$0xff]  }
 0x263   :  { %v1974_v51 = vld [vmem:[#allocation10] sm:$0xf] }
 0x264   :  { %2698 = vmatpush1.bf16.msra.mxu0 %v4158_v52  ;;  %2780 = vmatpush1.bf16.msra.mxu1 %v4161_v53  ;;  %v1979_v52 = vrot.slane %v1974_v51, %v347_v47  ;;  %v1987_v53 = vrot.slane %v1974_v51, %v355_v63 }
 0x265   :  { %2699 = vmatprep.subr.bf16.mxu0 %v4166_v54  ;;  %2781 = vmatprep.subr.bf16.mxu1 %v4169_v56  ;;  %v1983_v54 = vrot.slane %v1974_v51, %v351_v49  ;;  %v1991_v56 = vrot.slane %v1974_v51, %v359_v50 }
 0x268   :  { %2700 = vmatpush1.bf16.msra.mxu0 %v4164_v57  ;;  %2782 = vmatpush1.bf16.msra.mxu1 %v4167_v58 }
 0x269   :  { %2701 = vmatprep.subr.bf16.mxu0 %v4172_v59  ;;  %2783 = vmatprep.subr.bf16.mxu1 %v4175_v60 }
 0x26c   :  { %2702 = vmatpush1.bf16.msra.mxu0 %v4170_v61  ;;  %2784 = vmatpush1.bf16.msra.mxu1 %v4173_v62 }
 0x26d   :  { %2703 = vmatprep.subr.bf16.mxu0 %v4178_v0  ;;  %2785 = vmatprep.subr.bf16.mxu1 %v4181_v1 }
 0x270   :  { %2704 = vmatpush1.bf16.msra.mxu0 %v4176_v2  ;;  %2786 = vmatpush1.bf16.msra.mxu1 %v4179_v3 }
 0x271   :  { %2705 = vmatprep.subr.bf16.mxu0 %v4184_v5  ;;  %2787 = vmatprep.subr.bf16.mxu1 %v4187_v6 }
 0x274   :  { %2706 = vmatpush1.bf16.msra.mxu0 %v4182_v7  ;;  %2788 = vmatpush1.bf16.msra.mxu1 %v4185_v8 }
 0x275   :  { %2707 = vmatprep.subr.bf16.mxu0 %v4190_v10  ;;  %2789 = vmatprep.subr.bf16.mxu1 %v4193_v12  ;;  %v3529_v12 = vld [vmem:[#allocation13] ss:$0 sm:$0xff] }
 0x278   :  { %2708 = vmatpush1.bf16.msra.mxu0 %v4188_v13  ;;  %2790 = vmatpush1.bf16.msra.mxu1 %v4191_v14 }
 0x279   :  { %3562 = vmatprep.subr.bf16.mxu0 %v4194_v48  ;;  %3584 = vmatprep.subr.bf16.mxu1 %v4195_v16 }
 0x27b   :  { %2710 = vmatmul.mubr.bf16.vlgmr.msra.gmra.mrb[4].mxu0 %v1844_v19  ;;  %2792 = vmatmul.mubr.bf16.vlgmr.msra.gmra.mrb[4].mxu1 %v1844_v19 }
 0x27c   :  { %3563 = vmatpush3.bf16.msra.mxu0 %v4196_v17  ;;  %3585 = vmatpush3.bf16.msra.mxu1 %v4197_v18 }
 0x27d   :  { %3564 = vmatprep.subr.bf16.mxu0 %v4198_v55  ;;  %3586 = vmatprep.subr.bf16.mxu1 %v4199_v20 }
 0x280   :  { %3565 = vmatpush3.bf16.msra.mxu0 %v4200_v21  ;;  %3587 = vmatpush3.bf16.msra.mxu1 %v4201_v22 }
 0x281   :  { %3566 = vmatprep.subr.bf16.mxu0 %v4202_v11  ;;  %3588 = vmatprep.subr.bf16.mxu1 %v4203_v23 }
 0x284   :  { %3567 = vmatpush3.bf16.msra.mxu0 %v4204_v24  ;;  %3589 = vmatpush3.bf16.msra.mxu1 %v4205_v25 }
 0x285   :  { %3568 = vmatprep.subr.bf16.mxu0 %v4206_v26  ;;  %3590 = vmatprep.subr.bf16.mxu1 %v4207_v27 }
 0x288   :  { %3569 = vmatpush3.bf16.msra.mxu0 %v4208_v28  ;;  %3591 = vmatpush3.bf16.msra.mxu1 %v4209_v29 }
 0x289   :  { %3570 = vmatprep.subr.bf16.mxu0 %v4210_v30  ;;  %3592 = vmatprep.subr.bf16.mxu1 %v4211_v31 }
 0x28c   :  { %3571 = vmatpush3.bf16.msra.mxu0 %v4212_v32  ;;  %3593 = vmatpush3.bf16.msra.mxu1 %v4213_v33 }
 0x28d   :  { %3572 = vmatprep.subr.bf16.mxu0 %v4214_v34  ;;  %3594 = vmatprep.subr.bf16.mxu1 %v4215_v35 }
 0x290   :  { %3573 = vmatpush3.bf16.msra.mxu0 %v4216_v36  ;;  %3595 = vmatpush3.bf16.msra.mxu1 %v4217_v37 }
 0x291   :  { %3574 = vmatprep.subr.bf16.mxu0 %v4218_v38  ;;  %3596 = vmatprep.subr.bf16.mxu1 %v4219_v39 }
 0x294   :  { %3575 = vmatpush3.bf16.msra.mxu0 %v4220_v40  ;;  %3597 = vmatpush3.bf16.msra.mxu1 %v4221_v41 }
 0x295   :  { %3576 = vmatprep.subr.bf16.mxu0 %v4222_v42  ;;  %3598 = vmatprep.subr.bf16.mxu1 %v4223_v43 }
 0x298   :  { %3577 = vmatpush3.bf16.msra.mxu0 %v4224_v44  ;;  %3599 = vmatpush3.bf16.msra.mxu1 %v4225_v45 }
 0x34e   :  { %v2711_v57 = vpop.f32.mrb[4].mxu0  ;;  %v2793_v58 = vpop.f32.mrb[4].mxu1 }
 0x34f   :  { %v3610_v59 = vadd.f32 %v2711_v57, %v1979_v52  ;;  %v3612_v60 = vadd.f32 %v2793_v58, %v1987_v53  ;;  %v2713_v61 = vpop.f32.mrb[5].mxu0  ;;  %v2795_v62 = vpop.f32.mrb[5].mxu1 }
 0x350   :  { %v3611_v0 = vadd.f32 %v2713_v61, %v1983_v54  ;;  %v3613_v1 = vadd.f32 %v2795_v62, %v1991_v56  ;;  %v2715_v2 = vpop.f32.mrb[6].mxu0  ;;  %v2797_v3 = vpop.f32.mrb[6].mxu1 }
 0x351   :  { %v2800_v47 = vmax.f32 %v3610_v59, 0.0  ;;  %v2802_v4 = vmax.f32 %v3612_v60, 0.0  ;;  %v2716_v5 = vpop.f32.mrb[7].mxu0  ;;  %v2798_v63 = vpop.f32.mrb[7].mxu1 }
 0x352   :  { %v2801_v6 = vmax.f32 %v3611_v0, 0.0  ;;  %v2803_v7 = vmax.f32 %v3613_v1, 0.0 }
 0x353   :  { %v2804_v46 = vpack.c.bf16 %v2800_v47, %v2800_v47  ;;  %v2806_v50 = vpack.c.bf16 %v2802_v4, %v2802_v4 }
 0x354   :  { %v2805_v49 = vpack.c.bf16 %v2801_v6, %v2801_v6  ;;  %v2807_v8 = vpack.c.bf16 %v2803_v7, %v2803_v7 }
 0x356   :  { %3103 = vmatprep.mubr.bf16.mxu0 %v2805_v49  ;;  %3143 = vmatprep.mubr.bf16.mxu1 %v2807_v8 }
 0x357   :  { %3104 = vmatmul.mubr.bf16.vlgmr.msra.gmra.mrb[8].mxu0 %v2804_v46  ;;  %3144 = vmatmul.mubr.bf16.vlgmr.msra.gmra.mrb[8].mxu1 %v2806_v50 }
 0x42a   :  { %v3578_v9 = vpop.f32.mrb[8].mxu0  ;;  %v3600_v10 = vpop.f32.mrb[8].mxu1 }
 0x42b   :  { %v3579_v13 = vpop.f32.mrb[9].mxu0  ;;  %v3601_v14 = vpop.f32.mrb[9].mxu1 }
 0x42c   :  { %v3580_v15 = vadd.f32 %v3579_v13, %v3578_v9  ;;  %v3602_v48 = vadd.f32 %v3601_v14, %v3600_v10  ;;  %v3581_v16 = vpop.f32.mrb[10].mxu0  ;;  %v3603_v17 = vpop.f32.mrb[10].mxu1 }
 0x42d   :  { %v3582_v18 = vpop.f32.mrb[11].mxu0  ;;  %v3604_v19 = vpop.f32.mrb[11].mxu1 }
 0x42e   :  { %v3106_v55 = vadd.f32 %v3580_v15, %v3529_v12 }
 0x430   :  { %v3146_v20 = vadd.f32 %v3602_v48, %v3106_v55 }
 0x432   :  { %3151 = vst [vmem:[#allocation14] sm:$0xff] %v3146_v20 }
 0x433   :  { %4391 = shalt.err (!%p4388_p4)
}
 0x434   :  { %s4392_s11 = scalar_lea.hbm %s4611_s7, 128 }
 0x435   :  { %p4393_p5 = scmp.ne.s32.totalorder %s4611_s7, %s4392_s11  ;;  %p4396_p6 = scmp.lt.u32.totalorder %s4392_s11, %s4611_s7 }
 0x437   :  { %p4398_p7 = pnand %p4396_p6, %p4393_p5 }
 0x439   :  { %4401 = shalt.err (!%p4398_p7)
}
 0x43a   :  { %3161 = dma.vmem_to_hbm [thread:$0]  %s3159_s13, 128, %s4611_s7, [#allocation4]  }
 0x43b   :  { %4410 = dma.done.wait [#allocation4], 128  }
 0x43c   :  { %4411 = vsyncadd [#allocation4], 4294967168 }
 0x43d   :  { %3165 = vsyncpa [#allocation3], 1 }
 0x43e   :  { %3166 = vsyncpa [#allocation6], 1 }
 0x43f   :  { %3167 = vsyncpa [#allocation9], 1 }
 0x440   :  { %3168 = vsyncpa [#allocation12], 1 }
 0x441   :  { %3169 = vsyncpa [#allocation4], 1 }

</bundles_post_ra>
